<compile_context>
chip_gen: v7x
topology: tpu7x:2x2x1
jax: 0.10.0
libtpu: 0.0.40
codegen_flags: <defaults>
</compile_context>

<pallas_src>
import jax
import jax.numpy as jnp
from jax.experimental import pallas as pl
from jax.experimental.pallas import tpu as pltpu

# ---- synthetic small-BERT config ----
B, S, H = 2, 8, 32
NUM_HEADS = 2
HEAD_DIM = H // NUM_HEADS
INTER = 64
NUM_LAYERS = 2
VOCAB = 128
TYPE_VOCAB = 2
MAX_POS = 64
LN_EPS = 1e-12
ATTN_SCALE = float(HEAD_DIM) ** -0.5


def _layer_norm(x, gamma, beta, eps=LN_EPS):
    mu = jnp.mean(x, axis=-1, keepdims=True)
    var = jnp.mean((x - mu) ** 2, axis=-1, keepdims=True)
    return (x - mu) * jax.lax.rsqrt(var + eps) * gamma + beta


# ---------------- fused Pallas kernel ----------------

def fused_forward_kernel(x_ref, mask_ref,
                         wqkv_ref, bqkv_ref, wo_ref, bo_ref,
                         g1_ref, b1_ref, w_in_ref, b_in_ref,
                         w_out_ref, b_out_ref, g2_ref, b2_ref,
                         out_ref):
    """All NUM_LAYERS encoder layers + masked mean pooling in a single invocation.

    x_ref:    (B*S, H)  embeddings (batch folded into the M dimension)
    mask_ref: (B, S)    attention mask
    weights:  stacked along a leading layer axis, indexed statically per layer
    out_ref:  (B, H)    pooled features
    """
    x = x_ref[...]                              # (B*S, H)
    m = mask_ref[...]                           # (B, S)
    add_mask = (1.0 - m) * (-1e9)               # additive key mask, computed once

    for l in range(NUM_LAYERS):
        # --- self-attention ---
        # fused QKV projection: one (B*S,H) x (H,3H) matmul
        qkv = jnp.dot(x, wqkv_ref[l], preferred_element_type=jnp.float32) + bqkv_ref[l]
        q = qkv[:, 0 * H:1 * H]
        k = qkv[:, 1 * H:2 * H]
        v = qkv[:, 2 * H:3 * H]

        ctx_parts = []
        for b in range(B):
            rows = slice(b * S, (b + 1) * S)    # static per-batch slab
            qb, kb, vb = q[rows], k[rows], v[rows]
            amb = add_mask[b:b + 1, :]          # (1, S)
            head_parts = []
            for h in range(NUM_HEADS):
                cols = slice(h * HEAD_DIM, (h + 1) * HEAD_DIM)
                scores = jnp.dot(qb[:, cols], kb[:, cols].T,
                                 preferred_element_type=jnp.float32) * ATTN_SCALE + amb
                mmax = jnp.max(scores, axis=-1, keepdims=True)
                e = jnp.exp(scores - mmax)
                p = e / jnp.sum(e, axis=-1, keepdims=True)
                head_parts.append(jnp.dot(p, vb[:, cols],
                                          preferred_element_type=jnp.float32))
            ctx_parts.append(jnp.concatenate(head_parts, axis=-1))   # (S, H)
        ctx = jnp.concatenate(ctx_parts, axis=0)                     # (B*S, H)

        # single output projection over the full context
        attn_out = jnp.dot(ctx, wo_ref[l], preferred_element_type=jnp.float32) + bo_ref[l]
        x1 = _layer_norm(x + attn_out, g1_ref[l], b1_ref[l])

        # --- feed-forward ---
        hdn = jnp.dot(x1, w_in_ref[l], preferred_element_type=jnp.float32) + b_in_ref[l]
        hdn = jax.nn.gelu(hdn, approximate=True)
        ffn = jnp.dot(hdn, w_out_ref[l], preferred_element_type=jnp.float32) + b_out_ref[l]
        x = _layer_norm(x1 + ffn, g2_ref[l], b2_ref[l])

    # --- masked mean pooling: sum_s(mask * x) / clamp(sum_s(mask), 1e-9) ---
    sum_emb_parts = [
        jnp.dot(m[b:b + 1, :], x[b * S:(b + 1) * S, :],
                preferred_element_type=jnp.float32)                  # (1, H)
        for b in range(B)
    ]
    sum_emb = jnp.concatenate(sum_emb_parts, axis=0)                 # (B, H)
    sum_mask = jnp.maximum(jnp.sum(m, axis=-1, keepdims=True), 1e-9)  # (B, 1)
    out_ref[...] = sum_emb / sum_mask


# ---------------- wrapper ----------------

def stack_layer_params(layers):
    """Stack per-layer weights along a leading layer axis; fuse wq|wk|wv -> (H, 3H)."""
    return {
        'wqkv': jnp.stack([jnp.concatenate([lp['wq'], lp['wk'], lp['wv']], axis=1)
                           for lp in layers]),                       # (L, H, 3H)
        'bqkv': jnp.stack([jnp.concatenate([lp['bq'], lp['bk'], lp['bv']], axis=1)
                           for lp in layers]),                       # (L, 1, 3H)
        'wo': jnp.stack([lp['wo'] for lp in layers]),
        'bo': jnp.stack([lp['bo'] for lp in layers]),
        'g1': jnp.stack([lp['g1'] for lp in layers]),
        'b1': jnp.stack([lp['b1'] for lp in layers]),
        'w_in': jnp.stack([lp['w_in'] for lp in layers]),
        'b_in': jnp.stack([lp['b_in'] for lp in layers]),
        'w_out': jnp.stack([lp['w_out'] for lp in layers]),
        'b_out': jnp.stack([lp['b_out'] for lp in layers]),
        'g2': jnp.stack([lp['g2'] for lp in layers]),
        'b2': jnp.stack([lp['b2'] for lp in layers]),
    }


def fused_forward(x, mask, stacked):
    """Single pallas_call: all encoder layers + pooling, everything resident in VMEM."""
    args = [x.reshape(B * S, H), mask,
            stacked['wqkv'], stacked['bqkv'], stacked['wo'], stacked['bo'],
            stacked['g1'], stacked['b1'], stacked['w_in'], stacked['b_in'],
            stacked['w_out'], stacked['b_out'], stacked['g2'], stacked['b2']]
    return pl.pallas_call(
        fused_forward_kernel,
        out_shape=jax.ShapeDtypeStruct((B, H), jnp.float32),
        in_specs=[pl.BlockSpec(memory_space=pltpu.MemorySpace.VMEM) for _ in args],
        out_specs=pl.BlockSpec(memory_space=pltpu.MemorySpace.VMEM),
    )(*args)


def bert_embeddings(input_ids, params):
    # Embedding lookup + LayerNorm kept as JAX glue (gather-heavy, not the hot path).
    pos = jnp.arange(S, dtype=jnp.int32)
    tok_type = jnp.zeros((B, S), jnp.int32)
    emb = (params['word_emb'][input_ids]
           + params['pos_emb'][pos][None, :, :]
           + params['type_emb'][tok_type])
    return _layer_norm(emb, params['emb_g'], params['emb_b'])


def custom_model_forward(input_ids, attention_mask, params):
    x = bert_embeddings(input_ids, params)
    stacked = stack_layer_params(params['layers'])
    return fused_forward(x, attention_mask, stacked)


# ---------------- pure-JAX reference (for correctness check) ----------------

def _ref_layer(x, mask, p):
    add_mask = (1.0 - mask)[:, None, None, :] * (-1e9)              # (B,1,1,S)
    q = x @ p['wq'] + p['bq']; k = x @ p['wk'] + p['bk']; v = x @ p['wv'] + p['bv']
    def split(t):
        return t.reshape(B, S, NUM_HEADS, HEAD_DIM).transpose(0, 2, 1, 3)
    qh, kh, vh = split(q), split(k), split(v)
    scores = jnp.einsum('bhqd,bhkd->bhqk', qh, kh) / jnp.sqrt(jnp.float32(HEAD_DIM))
    p_attn = jax.nn.softmax(scores + add_mask, axis=-1)
    ctx = jnp.einsum('bhqk,bhkd->bhqd', p_attn, vh).transpose(0, 2, 1, 3).reshape(B, S, H)
    x1 = _layer_norm(x + ctx @ p['wo'] + p['bo'], p['g1'], p['b1'])
    ffn = jax.nn.gelu(x1 @ p['w_in'] + p['b_in'], approximate=True) @ p['w_out'] + p['b_out']
    return _layer_norm(x1 + ffn, p['g2'], p['b2'])


def reference_forward(input_ids, attention_mask, params):
    x = bert_embeddings(input_ids, params)
    for lp in params['layers']:
        x = _ref_layer(x, attention_mask, lp)
    m = attention_mask[:, :, None]
    return jnp.sum(x * m, axis=1) / jnp.clip(jnp.sum(m, axis=1), 1e-9)


# ---------------- deterministic parameter init ----------------

def init_params(key):
    std = 0.02
    ks = iter(jax.random.split(key, 8 + NUM_LAYERS * 8))
    params = {
        'word_emb': std * jax.random.normal(next(ks), (VOCAB, H), jnp.float32),
        'pos_emb':  std * jax.random.normal(next(ks), (MAX_POS, H), jnp.float32),
        'type_emb': std * jax.random.normal(next(ks), (TYPE_VOCAB, H), jnp.float32),
        'emb_g': jnp.ones((1, H), jnp.float32),
        'emb_b': jnp.zeros((1, H), jnp.float32),
        'layers': [],
    }
    for _ in range(NUM_LAYERS):
        lp = {
            'wq': std * jax.random.normal(next(ks), (H, H), jnp.float32),
            'bq': jnp.zeros((1, H), jnp.float32),
            'wk': std * jax.random.normal(next(ks), (H, H), jnp.float32),
            'bk': jnp.zeros((1, H), jnp.float32),
            'wv': std * jax.random.normal(next(ks), (H, H), jnp.float32),
            'bv': jnp.zeros((1, H), jnp.float32),
            'wo': std * jax.random.normal(next(ks), (H, H), jnp.float32),
            'bo': jnp.zeros((1, H), jnp.float32),
            'g1': jnp.ones((1, H), jnp.float32),
            'b1': jnp.zeros((1, H), jnp.float32),
            'w_in': std * jax.random.normal(next(ks), (H, INTER), jnp.float32),
            'b_in': jnp.zeros((1, INTER), jnp.float32),
            'w_out': std * jax.random.normal(next(ks), (INTER, H), jnp.float32),
            'b_out': jnp.zeros((1, H), jnp.float32),
            'g2': jnp.ones((1, H), jnp.float32),
            'b2': jnp.zeros((1, H), jnp.float32),
        }
        params['layers'].append(lp)
    return params


if __name__ == "__main__":
    key = jax.random.PRNGKey(0)
    k_param, k_ids = jax.random.split(key)
    params = init_params(k_param)

    # TODO(synk): pretrained 'NlpHUST/vibert4news-base-cased' weights cannot be loaded;
    # synthetic deterministic weights are used instead.
    input_ids = jax.random.randint(k_ids, (B, S), 0, VOCAB, dtype=jnp.int32)
    attention_mask = jnp.array([[1, 1, 1, 1, 1, 1, 1, 1],
                                [1, 1, 1, 1, 1, 0, 0, 0]], dtype=jnp.float32)

    feature = custom_model_forward(input_ids, attention_mask, params)
    feature = jax.block_until_ready(feature)
    assert feature.shape == (B, H) and feature.dtype == jnp.float32

    ref = jax.block_until_ready(reference_forward(input_ids, attention_mask, params))
    assert jnp.allclose(feature, ref, rtol=1e-3, atol=1e-3), "mismatch vs JAX reference"

    print("KERNEL_OK")
</pallas_src>

<mosaic_0001>
module attributes {stable_mosaic.version = 11 : i64} {
  func.func @fused_forward_kernel(%arg0: memref<16x32xf32, #tpu.memory_space<vmem>>, %arg1: memref<2x8xf32, #tpu.memory_space<vmem>>, %arg2: memref<2x32x96xf32, #tpu.memory_space<vmem>>, %arg3: memref<2x1x96xf32, #tpu.memory_space<vmem>>, %arg4: memref<2x32x32xf32, #tpu.memory_space<vmem>>, %arg5: memref<2x1x32xf32, #tpu.memory_space<vmem>>, %arg6: memref<2x1x32xf32, #tpu.memory_space<vmem>>, %arg7: memref<2x1x32xf32, #tpu.memory_space<vmem>>, %arg8: memref<2x32x64xf32, #tpu.memory_space<vmem>>, %arg9: memref<2x1x64xf32, #tpu.memory_space<vmem>>, %arg10: memref<2x64x32xf32, #tpu.memory_space<vmem>>, %arg11: memref<2x1x32xf32, #tpu.memory_space<vmem>>, %arg12: memref<2x1x32xf32, #tpu.memory_space<vmem>>, %arg13: memref<2x1x32xf32, #tpu.memory_space<vmem>>, %arg14: memref<2x32xf32, #tpu.memory_space<vmem>>) attributes {dimension_semantics = [], scalar_prefetch = 0 : i64, scratch_operands = 0 : i64, tpu.core_type = #tpu.core_type<tc>} {
    %c0 = arith.constant 0 : index
    %c0_0 = arith.constant 0 : index
    %0 = vector.load %arg0[%c0, %c0_0] : memref<16x32xf32, #tpu.memory_space<vmem>>, vector<16x32xf32>
    %c0_1 = arith.constant 0 : index
    %c0_2 = arith.constant 0 : index
    %1 = vector.load %arg1[%c0_1, %c0_2] : memref<2x8xf32, #tpu.memory_space<vmem>>, vector<2x8xf32>
    %cst = arith.constant 1.000000e+00 : f32
    %2 = vector.broadcast %cst : f32 to vector<2x8xf32>
    %3 = arith.subf %2, %1 : vector<2x8xf32>
    %cst_3 = arith.constant -1.000000e+09 : f32
    %4 = vector.broadcast %cst_3 : f32 to vector<2x8xf32>
    %5 = arith.mulf %3, %4 : vector<2x8xf32>
    %c0_4 = arith.constant 0 : index
    %c0_5 = arith.constant 0 : index
    %c0_6 = arith.constant 0 : index
    %6 = vector.load %arg2[%c0_4, %c0_5, %c0_6] : memref<2x32x96xf32, #tpu.memory_space<vmem>>, vector<1x32x96xf32>
    %7 = vector.shape_cast %6 : vector<1x32x96xf32> to vector<32x96xf32>
    %cst_7 = arith.constant dense<0.000000e+00> : vector<16x96xf32>
    %8 = tpu.matmul %0, %7, %cst_7 {dimension_numbers = #tpu.dot_dimension_numbers<[1], [0], [0], [1], [0, 0, 1, 1], [], []>} : vector<16x32xf32>, vector<32x96xf32>, vector<16x96xf32> -> vector<16x96xf32>
    %c0_8 = arith.constant 0 : index
    %c0_9 = arith.constant 0 : index
    %c0_10 = arith.constant 0 : index
    %9 = vector.load %arg3[%c0_8, %c0_9, %c0_10] : memref<2x1x96xf32, #tpu.memory_space<vmem>>, vector<1x1x96xf32>
    %10 = vector.shape_cast %9 : vector<1x1x96xf32> to vector<1x96xf32>
    %11 = vector.broadcast %10 : vector<1x96xf32> to vector<16x96xf32>
    %12 = arith.addf %8, %11 : vector<16x96xf32>
    %13 = vector.extract_strided_slice %12 {offsets = [0, 0], sizes = [16, 32], strides = [1, 1]} : vector<16x96xf32> to vector<16x32xf32>
    %14 = vector.extract_strided_slice %12 {offsets = [0, 32], sizes = [16, 32], strides = [1, 1]} : vector<16x96xf32> to vector<16x32xf32>
    %15 = vector.extract_strided_slice %12 {offsets = [0, 64], sizes = [16, 32], strides = [1, 1]} : vector<16x96xf32> to vector<16x32xf32>
    %16 = vector.extract_strided_slice %13 {offsets = [0, 0], sizes = [8, 32], strides = [1, 1]} : vector<16x32xf32> to vector<8x32xf32>
    %17 = vector.extract_strided_slice %14 {offsets = [0, 0], sizes = [8, 32], strides = [1, 1]} : vector<16x32xf32> to vector<8x32xf32>
    %18 = vector.extract_strided_slice %15 {offsets = [0, 0], sizes = [8, 32], strides = [1, 1]} : vector<16x32xf32> to vector<8x32xf32>
    %19 = vector.extract_strided_slice %5 {offsets = [0, 0], sizes = [1, 8], strides = [1, 1]} : vector<2x8xf32> to vector<1x8xf32>
    %20 = vector.extract_strided_slice %16 {offsets = [0, 0], sizes = [8, 16], strides = [1, 1]} : vector<8x32xf32> to vector<8x16xf32>
    %21 = vector.extract_strided_slice %17 {offsets = [0, 0], sizes = [8, 16], strides = [1, 1]} : vector<8x32xf32> to vector<8x16xf32>
    %22 = tpu.transpose %21, [1, 0] : vector<8x16xf32> -> vector<16x8xf32>
    %cst_11 = arith.constant dense<0.000000e+00> : vector<8x8xf32>
    %23 = tpu.matmul %20, %22, %cst_11 {dimension_numbers = #tpu.dot_dimension_numbers<[1], [0], [0], [1], [0, 0, 1, 1], [], []>} : vector<8x16xf32>, vector<16x8xf32>, vector<8x8xf32> -> vector<8x8xf32>
    %cst_12 = arith.constant 2.500000e-01 : f32
    %24 = vector.broadcast %cst_12 : f32 to vector<8x8xf32>
    %25 = arith.mulf %23, %24 : vector<8x8xf32>
    %26 = vector.broadcast %19 : vector<1x8xf32> to vector<8x8xf32>
    %27 = arith.addf %25, %26 : vector<8x8xf32>
    %cst_13 = arith.constant dense<0xFF800000> : vector<8xf32>
    %28 = vector.multi_reduction <maximumf>, %27, %cst_13 [1] : vector<8x8xf32> to vector<8xf32>
    %29 = vector.shape_cast %28 : vector<8xf32> to vector<8x1xf32>
    %30 = vector.broadcast %29 : vector<8x1xf32> to vector<8x8xf32>
    %31 = arith.subf %27, %30 : vector<8x8xf32>
    %32 = math.exp %31 : vector<8x8xf32>
    %cst_14 = arith.constant dense<0.000000e+00> : vector<8xf32>
    %33 = vector.multi_reduction <add>, %32, %cst_14 [1] : vector<8x8xf32> to vector<8xf32>
    %34 = vector.shape_cast %33 : vector<8xf32> to vector<8x1xf32>
    %35 = vector.broadcast %34 : vector<8x1xf32> to vector<8x8xf32>
    %36 = arith.divf %32, %35 : vector<8x8xf32>
    %37 = vector.extract_strided_slice %18 {offsets = [0, 0], sizes = [8, 16], strides = [1, 1]} : vector<8x32xf32> to vector<8x16xf32>
    %cst_15 = arith.constant dense<0.000000e+00> : vector<8x16xf32>
    %38 = tpu.matmul %36, %37, %cst_15 {dimension_numbers = #tpu.dot_dimension_numbers<[1], [0], [0], [1], [0, 0, 1, 1], [], []>} : vector<8x8xf32>, vector<8x16xf32>, vector<8x16xf32> -> vector<8x16xf32>
    %39 = vector.extract_strided_slice %16 {offsets = [0, 16], sizes = [8, 16], strides = [1, 1]} : vector<8x32xf32> to vector<8x16xf32>
    %40 = vector.extract_strided_slice %17 {offsets = [0, 16], sizes = [8, 16], strides = [1, 1]} : vector<8x32xf32> to vector<8x16xf32>
    %41 = tpu.transpose %40, [1, 0] : vector<8x16xf32> -> vector<16x8xf32>
    %cst_16 = arith.constant dense<0.000000e+00> : vector<8x8xf32>
    %42 = tpu.matmul %39, %41, %cst_16 {dimension_numbers = #tpu.dot_dimension_numbers<[1], [0], [0], [1], [0, 0, 1, 1], [], []>} : vector<8x16xf32>, vector<16x8xf32>, vector<8x8xf32> -> vector<8x8xf32>
    %cst_17 = arith.constant 2.500000e-01 : f32
    %43 = vector.broadcast %cst_17 : f32 to vector<8x8xf32>
    %44 = arith.mulf %42, %43 : vector<8x8xf32>
    %45 = vector.broadcast %19 : vector<1x8xf32> to vector<8x8xf32>
    %46 = arith.addf %44, %45 : vector<8x8xf32>
    %cst_18 = arith.constant dense<0xFF800000> : vector<8xf32>
    %47 = vector.multi_reduction <maximumf>, %46, %cst_18 [1] : vector<8x8xf32> to vector<8xf32>
    %48 = vector.shape_cast %47 : vector<8xf32> to vector<8x1xf32>
    %49 = vector.broadcast %48 : vector<8x1xf32> to vector<8x8xf32>
    %50 = arith.subf %46, %49 : vector<8x8xf32>
    %51 = math.exp %50 : vector<8x8xf32>
    %cst_19 = arith.constant dense<0.000000e+00> : vector<8xf32>
    %52 = vector.multi_reduction <add>, %51, %cst_19 [1] : vector<8x8xf32> to vector<8xf32>
    %53 = vector.shape_cast %52 : vector<8xf32> to vector<8x1xf32>
    %54 = vector.broadcast %53 : vector<8x1xf32> to vector<8x8xf32>
    %55 = arith.divf %51, %54 : vector<8x8xf32>
    %56 = vector.extract_strided_slice %18 {offsets = [0, 16], sizes = [8, 16], strides = [1, 1]} : vector<8x32xf32> to vector<8x16xf32>
    %cst_20 = arith.constant dense<0.000000e+00> : vector<8x16xf32>
    %57 = tpu.matmul %55, %56, %cst_20 {dimension_numbers = #tpu.dot_dimension_numbers<[1], [0], [0], [1], [0, 0, 1, 1], [], []>} : vector<8x8xf32>, vector<8x16xf32>, vector<8x16xf32> -> vector<8x16xf32>
    %58 = tpu.concatenate %38, %57 in 1 : vector<8x16xf32>, vector<8x16xf32> -> vector<8x32xf32>
    %59 = vector.extract_strided_slice %13 {offsets = [8, 0], sizes = [8, 32], strides = [1, 1]} : vector<16x32xf32> to vector<8x32xf32>
    %60 = vector.extract_strided_slice %14 {offsets = [8, 0], sizes = [8, 32], strides = [1, 1]} : vector<16x32xf32> to vector<8x32xf32>
    %61 = vector.extract_strided_slice %15 {offsets = [8, 0], sizes = [8, 32], strides = [1, 1]} : vector<16x32xf32> to vector<8x32xf32>
    %62 = vector.extract_strided_slice %5 {offsets = [1, 0], sizes = [1, 8], strides = [1, 1]} : vector<2x8xf32> to vector<1x8xf32>
    %63 = vector.extract_strided_slice %59 {offsets = [0, 0], sizes = [8, 16], strides = [1, 1]} : vector<8x32xf32> to vector<8x16xf32>
    %64 = vector.extract_strided_slice %60 {offsets = [0, 0], sizes = [8, 16], strides = [1, 1]} : vector<8x32xf32> to vector<8x16xf32>
    %65 = tpu.transpose %64, [1, 0] : vector<8x16xf32> -> vector<16x8xf32>
    %cst_21 = arith.constant dense<0.000000e+00> : vector<8x8xf32>
    %66 = tpu.matmul %63, %65, %cst_21 {dimension_numbers = #tpu.dot_dimension_numbers<[1], [0], [0], [1], [0, 0, 1, 1], [], []>} : vector<8x16xf32>, vector<16x8xf32>, vector<8x8xf32> -> vector<8x8xf32>
    %cst_22 = arith.constant 2.500000e-01 : f32
    %67 = vector.broadcast %cst_22 : f32 to vector<8x8xf32>
    %68 = arith.mulf %66, %67 : vector<8x8xf32>
    %69 = vector.broadcast %62 : vector<1x8xf32> to vector<8x8xf32>
    %70 = arith.addf %68, %69 : vector<8x8xf32>
    %cst_23 = arith.constant dense<0xFF800000> : vector<8xf32>
    %71 = vector.multi_reduction <maximumf>, %70, %cst_23 [1] : vector<8x8xf32> to vector<8xf32>
    %72 = vector.shape_cast %71 : vector<8xf32> to vector<8x1xf32>
    %73 = vector.broadcast %72 : vector<8x1xf32> to vector<8x8xf32>
    %74 = arith.subf %70, %73 : vector<8x8xf32>
    %75 = math.exp %74 : vector<8x8xf32>
    %cst_24 = arith.constant dense<0.000000e+00> : vector<8xf32>
    %76 = vector.multi_reduction <add>, %75, %cst_24 [1] : vector<8x8xf32> to vector<8xf32>
    %77 = vector.shape_cast %76 : vector<8xf32> to vector<8x1xf32>
    %78 = vector.broadcast %77 : vector<8x1xf32> to vector<8x8xf32>
    %79 = arith.divf %75, %78 : vector<8x8xf32>
    %80 = vector.extract_strided_slice %61 {offsets = [0, 0], sizes = [8, 16], strides = [1, 1]} : vector<8x32xf32> to vector<8x16xf32>
    %cst_25 = arith.constant dense<0.000000e+00> : vector<8x16xf32>
    %81 = tpu.matmul %79, %80, %cst_25 {dimension_numbers = #tpu.dot_dimension_numbers<[1], [0], [0], [1], [0, 0, 1, 1], [], []>} : vector<8x8xf32>, vector<8x16xf32>, vector<8x16xf32> -> vector<8x16xf32>
    %82 = vector.extract_strided_slice %59 {offsets = [0, 16], sizes = [8, 16], strides = [1, 1]} : vector<8x32xf32> to vector<8x16xf32>
    %83 = vector.extract_strided_slice %60 {offsets = [0, 16], sizes = [8, 16], strides = [1, 1]} : vector<8x32xf32> to vector<8x16xf32>
    %84 = tpu.transpose %83, [1, 0] : vector<8x16xf32> -> vector<16x8xf32>
    %cst_26 = arith.constant dense<0.000000e+00> : vector<8x8xf32>
    %85 = tpu.matmul %82, %84, %cst_26 {dimension_numbers = #tpu.dot_dimension_numbers<[1], [0], [0], [1], [0, 0, 1, 1], [], []>} : vector<8x16xf32>, vector<16x8xf32>, vector<8x8xf32> -> vector<8x8xf32>
    %cst_27 = arith.constant 2.500000e-01 : f32
    %86 = vector.broadcast %cst_27 : f32 to vector<8x8xf32>
    %87 = arith.mulf %85, %86 : vector<8x8xf32>
    %88 = vector.broadcast %62 : vector<1x8xf32> to vector<8x8xf32>
    %89 = arith.addf %87, %88 : vector<8x8xf32>
    %cst_28 = arith.constant dense<0xFF800000> : vector<8xf32>
    %90 = vector.multi_reduction <maximumf>, %89, %cst_28 [1] : vector<8x8xf32> to vector<8xf32>
    %91 = vector.shape_cast %90 : vector<8xf32> to vector<8x1xf32>
    %92 = vector.broadcast %91 : vector<8x1xf32> to vector<8x8xf32>
    %93 = arith.subf %89, %92 : vector<8x8xf32>
    %94 = math.exp %93 : vector<8x8xf32>
    %cst_29 = arith.constant dense<0.000000e+00> : vector<8xf32>
    %95 = vector.multi_reduction <add>, %94, %cst_29 [1] : vector<8x8xf32> to vector<8xf32>
    %96 = vector.shape_cast %95 : vector<8xf32> to vector<8x1xf32>
    %97 = vector.broadcast %96 : vector<8x1xf32> to vector<8x8xf32>
    %98 = arith.divf %94, %97 : vector<8x8xf32>
    %99 = vector.extract_strided_slice %61 {offsets = [0, 16], sizes = [8, 16], strides = [1, 1]} : vector<8x32xf32> to vector<8x16xf32>
    %cst_30 = arith.constant dense<0.000000e+00> : vector<8x16xf32>
    %100 = tpu.matmul %98, %99, %cst_30 {dimension_numbers = #tpu.dot_dimension_numbers<[1], [0], [0], [1], [0, 0, 1, 1], [], []>} : vector<8x8xf32>, vector<8x16xf32>, vector<8x16xf32> -> vector<8x16xf32>
    %101 = tpu.concatenate %81, %100 in 1 : vector<8x16xf32>, vector<8x16xf32> -> vector<8x32xf32>
    %102 = tpu.concatenate %58, %101 in 0 : vector<8x32xf32>, vector<8x32xf32> -> vector<16x32xf32>
    %c0_31 = arith.constant 0 : index
    %c0_32 = arith.constant 0 : index
    %c0_33 = arith.constant 0 : index
    %103 = vector.load %arg4[%c0_31, %c0_32, %c0_33] : memref<2x32x32xf32, #tpu.memory_space<vmem>>, vector<1x32x32xf32>
    %104 = vector.shape_cast %103 : vector<1x32x32xf32> to vector<32x32xf32>
    %cst_34 = arith.constant dense<0.000000e+00> : vector<16x32xf32>
    %105 = tpu.matmul %102, %104, %cst_34 {dimension_numbers = #tpu.dot_dimension_numbers<[1], [0], [0], [1], [0, 0, 1, 1], [], []>} : vector<16x32xf32>, vector<32x32xf32>, vector<16x32xf32> -> vector<16x32xf32>
    %c0_35 = arith.constant 0 : index
    %c0_36 = arith.constant 0 : index
    %c0_37 = arith.constant 0 : index
    %106 = vector.load %arg5[%c0_35, %c0_36, %c0_37] : memref<2x1x32xf32, #tpu.memory_space<vmem>>, vector<1x1x32xf32>
    %107 = vector.shape_cast %106 : vector<1x1x32xf32> to vector<1x32xf32>
    %108 = vector.broadcast %107 : vector<1x32xf32> to vector<16x32xf32>
    %109 = arith.addf %105, %108 : vector<16x32xf32>
    %110 = arith.addf %0, %109 : vector<16x32xf32>
    %c0_38 = arith.constant 0 : index
    %c0_39 = arith.constant 0 : index
    %c0_40 = arith.constant 0 : index
    %111 = vector.load %arg6[%c0_38, %c0_39, %c0_40] : memref<2x1x32xf32, #tpu.memory_space<vmem>>, vector<1x1x32xf32>
    %112 = vector.shape_cast %111 : vector<1x1x32xf32> to vector<1x32xf32>
    %c0_41 = arith.constant 0 : index
    %c0_42 = arith.constant 0 : index
    %c0_43 = arith.constant 0 : index
    %113 = vector.load %arg7[%c0_41, %c0_42, %c0_43] : memref<2x1x32xf32, #tpu.memory_space<vmem>>, vector<1x1x32xf32>
    %114 = vector.shape_cast %113 : vector<1x1x32xf32> to vector<1x32xf32>
    %cst_44 = arith.constant dense<0.000000e+00> : vector<16xf32>
    %115 = vector.multi_reduction <add>, %110, %cst_44 [1] : vector<16x32xf32> to vector<16xf32>
    %116 = vector.shape_cast %115 : vector<16xf32> to vector<16x1xf32>
    %cst_45 = arith.constant 3.200000e+01 : f32
    %117 = vector.broadcast %cst_45 : f32 to vector<16x1xf32>
    %118 = arith.divf %116, %117 : vector<16x1xf32>
    %119 = vector.broadcast %118 : vector<16x1xf32> to vector<16x32xf32>
    %120 = arith.subf %110, %119 : vector<16x32xf32>
    %121 = arith.mulf %120, %120 : vector<16x32xf32>
    %cst_46 = arith.constant dense<0.000000e+00> : vector<16xf32>
    %122 = vector.multi_reduction <add>, %121, %cst_46 [1] : vector<16x32xf32> to vector<16xf32>
    %123 = vector.shape_cast %122 : vector<16xf32> to vector<16x1xf32>
    %cst_47 = arith.constant 3.200000e+01 : f32
    %124 = vector.broadcast %cst_47 : f32 to vector<16x1xf32>
    %125 = arith.divf %123, %124 : vector<16x1xf32>
    %126 = vector.broadcast %118 : vector<16x1xf32> to vector<16x32xf32>
    %127 = arith.subf %110, %126 : vector<16x32xf32>
    %cst_48 = arith.constant 9.99999996E-13 : f32
    %128 = vector.broadcast %cst_48 : f32 to vector<16x1xf32>
    %129 = arith.addf %125, %128 : vector<16x1xf32>
    %130 = math.rsqrt %129 : vector<16x1xf32>
    %131 = vector.broadcast %130 : vector<16x1xf32> to vector<16x32xf32>
    %132 = arith.mulf %127, %131 : vector<16x32xf32>
    %133 = vector.broadcast %112 : vector<1x32xf32> to vector<16x32xf32>
    %134 = arith.mulf %132, %133 : vector<16x32xf32>
    %135 = vector.broadcast %114 : vector<1x32xf32> to vector<16x32xf32>
    %136 = arith.addf %134, %135 : vector<16x32xf32>
    %c0_49 = arith.constant 0 : index
    %c0_50 = arith.constant 0 : index
    %c0_51 = arith.constant 0 : index
    %137 = vector.load %arg8[%c0_49, %c0_50, %c0_51] : memref<2x32x64xf32, #tpu.memory_space<vmem>>, vector<1x32x64xf32>
    %138 = vector.shape_cast %137 : vector<1x32x64xf32> to vector<32x64xf32>
    %cst_52 = arith.constant dense<0.000000e+00> : vector<16x64xf32>
    %139 = tpu.matmul %136, %138, %cst_52 {dimension_numbers = #tpu.dot_dimension_numbers<[1], [0], [0], [1], [0, 0, 1, 1], [], []>} : vector<16x32xf32>, vector<32x64xf32>, vector<16x64xf32> -> vector<16x64xf32>
    %c0_53 = arith.constant 0 : index
    %c0_54 = arith.constant 0 : index
    %c0_55 = arith.constant 0 : index
    %140 = vector.load %arg9[%c0_53, %c0_54, %c0_55] : memref<2x1x64xf32, #tpu.memory_space<vmem>>, vector<1x1x64xf32>
    %141 = vector.shape_cast %140 : vector<1x1x64xf32> to vector<1x64xf32>
    %142 = vector.broadcast %141 : vector<1x64xf32> to vector<16x64xf32>
    %143 = arith.addf %139, %142 : vector<16x64xf32>
    %144 = arith.mulf %143, %143 : vector<16x64xf32>
    %145 = arith.mulf %143, %144 : vector<16x64xf32>
    %cst_56 = arith.constant 4.471500e-02 : f32
    %146 = vector.broadcast %cst_56 : f32 to vector<16x64xf32>
    %147 = arith.mulf %146, %145 : vector<16x64xf32>
    %148 = arith.addf %143, %147 : vector<16x64xf32>
    %cst_57 = arith.constant 0.797884583 : f32
    %149 = vector.broadcast %cst_57 : f32 to vector<16x64xf32>
    %150 = arith.mulf %149, %148 : vector<16x64xf32>
    %151 = math.tanh %150 : vector<16x64xf32>
    %cst_58 = arith.constant 1.000000e+00 : f32
    %152 = vector.broadcast %cst_58 : f32 to vector<16x64xf32>
    %153 = arith.addf %152, %151 : vector<16x64xf32>
    %cst_59 = arith.constant 5.000000e-01 : f32
    %154 = vector.broadcast %cst_59 : f32 to vector<16x64xf32>
    %155 = arith.mulf %154, %153 : vector<16x64xf32>
    %156 = arith.mulf %143, %155 : vector<16x64xf32>
    %c0_60 = arith.constant 0 : index
    %c0_61 = arith.constant 0 : index
    %c0_62 = arith.constant 0 : index
    %157 = vector.load %arg10[%c0_60, %c0_61, %c0_62] : memref<2x64x32xf32, #tpu.memory_space<vmem>>, vector<1x64x32xf32>
    %158 = vector.shape_cast %157 : vector<1x64x32xf32> to vector<64x32xf32>
    %cst_63 = arith.constant dense<0.000000e+00> : vector<16x32xf32>
    %159 = tpu.matmul %156, %158, %cst_63 {dimension_numbers = #tpu.dot_dimension_numbers<[1], [0], [0], [1], [0, 0, 1, 1], [], []>} : vector<16x64xf32>, vector<64x32xf32>, vector<16x32xf32> -> vector<16x32xf32>
    %c0_64 = arith.constant 0 : index
    %c0_65 = arith.constant 0 : index
    %c0_66 = arith.constant 0 : index
    %160 = vector.load %arg11[%c0_64, %c0_65, %c0_66] : memref<2x1x32xf32, #tpu.memory_space<vmem>>, vector<1x1x32xf32>
    %161 = vector.shape_cast %160 : vector<1x1x32xf32> to vector<1x32xf32>
    %162 = vector.broadcast %161 : vector<1x32xf32> to vector<16x32xf32>
    %163 = arith.addf %159, %162 : vector<16x32xf32>
    %164 = arith.addf %136, %163 : vector<16x32xf32>
    %c0_67 = arith.constant 0 : index
    %c0_68 = arith.constant 0 : index
    %c0_69 = arith.constant 0 : index
    %165 = vector.load %arg12[%c0_67, %c0_68, %c0_69] : memref<2x1x32xf32, #tpu.memory_space<vmem>>, vector<1x1x32xf32>
    %166 = vector.shape_cast %165 : vector<1x1x32xf32> to vector<1x32xf32>
    %c0_70 = arith.constant 0 : index
    %c0_71 = arith.constant 0 : index
    %c0_72 = arith.constant 0 : index
    %167 = vector.load %arg13[%c0_70, %c0_71, %c0_72] : memref<2x1x32xf32, #tpu.memory_space<vmem>>, vector<1x1x32xf32>
    %168 = vector.shape_cast %167 : vector<1x1x32xf32> to vector<1x32xf32>
    %cst_73 = arith.constant dense<0.000000e+00> : vector<16xf32>
    %169 = vector.multi_reduction <add>, %164, %cst_73 [1] : vector<16x32xf32> to vector<16xf32>
    %170 = vector.shape_cast %169 : vector<16xf32> to vector<16x1xf32>
    %cst_74 = arith.constant 3.200000e+01 : f32
    %171 = vector.broadcast %cst_74 : f32 to vector<16x1xf32>
    %172 = arith.divf %170, %171 : vector<16x1xf32>
    %173 = vector.broadcast %172 : vector<16x1xf32> to vector<16x32xf32>
    %174 = arith.subf %164, %173 : vector<16x32xf32>
    %175 = arith.mulf %174, %174 : vector<16x32xf32>
    %cst_75 = arith.constant dense<0.000000e+00> : vector<16xf32>
    %176 = vector.multi_reduction <add>, %175, %cst_75 [1] : vector<16x32xf32> to vector<16xf32>
    %177 = vector.shape_cast %176 : vector<16xf32> to vector<16x1xf32>
    %cst_76 = arith.constant 3.200000e+01 : f32
    %178 = vector.broadcast %cst_76 : f32 to vector<16x1xf32>
    %179 = arith.divf %177, %178 : vector<16x1xf32>
    %180 = vector.broadcast %172 : vector<16x1xf32> to vector<16x32xf32>
    %181 = arith.subf %164, %180 : vector<16x32xf32>
    %cst_77 = arith.constant 9.99999996E-13 : f32
    %182 = vector.broadcast %cst_77 : f32 to vector<16x1xf32>
    %183 = arith.addf %179, %182 : vector<16x1xf32>
    %184 = math.rsqrt %183 : vector<16x1xf32>
    %185 = vector.broadcast %184 : vector<16x1xf32> to vector<16x32xf32>
    %186 = arith.mulf %181, %185 : vector<16x32xf32>
    %187 = vector.broadcast %166 : vector<1x32xf32> to vector<16x32xf32>
    %188 = arith.mulf %186, %187 : vector<16x32xf32>
    %189 = vector.broadcast %168 : vector<1x32xf32> to vector<16x32xf32>
    %190 = arith.addf %188, %189 : vector<16x32xf32>
    %c1 = arith.constant 1 : index
    %c0_78 = arith.constant 0 : index
    %c0_79 = arith.constant 0 : index
    %191 = vector.load %arg2[%c1, %c0_78, %c0_79] : memref<2x32x96xf32, #tpu.memory_space<vmem>>, vector<1x32x96xf32>
    %192 = vector.shape_cast %191 : vector<1x32x96xf32> to vector<32x96xf32>
    %cst_80 = arith.constant dense<0.000000e+00> : vector<16x96xf32>
    %193 = tpu.matmul %190, %192, %cst_80 {dimension_numbers = #tpu.dot_dimension_numbers<[1], [0], [0], [1], [0, 0, 1, 1], [], []>} : vector<16x32xf32>, vector<32x96xf32>, vector<16x96xf32> -> vector<16x96xf32>
    %c1_81 = arith.constant 1 : index
    %c0_82 = arith.constant 0 : index
    %c0_83 = arith.constant 0 : index
    %194 = vector.load %arg3[%c1_81, %c0_82, %c0_83] : memref<2x1x96xf32, #tpu.memory_space<vmem>>, vector<1x1x96xf32>
    %195 = vector.shape_cast %194 : vector<1x1x96xf32> to vector<1x96xf32>
    %196 = vector.broadcast %195 : vector<1x96xf32> to vector<16x96xf32>
    %197 = arith.addf %193, %196 : vector<16x96xf32>
    %198 = vector.extract_strided_slice %197 {offsets = [0, 0], sizes = [16, 32], strides = [1, 1]} : vector<16x96xf32> to vector<16x32xf32>
    %199 = vector.extract_strided_slice %197 {offsets = [0, 32], sizes = [16, 32], strides = [1, 1]} : vector<16x96xf32> to vector<16x32xf32>
    %200 = vector.extract_strided_slice %197 {offsets = [0, 64], sizes = [16, 32], strides = [1, 1]} : vector<16x96xf32> to vector<16x32xf32>
    %201 = vector.extract_strided_slice %198 {offsets = [0, 0], sizes = [8, 32], strides = [1, 1]} : vector<16x32xf32> to vector<8x32xf32>
    %202 = vector.extract_strided_slice %199 {offsets = [0, 0], sizes = [8, 32], strides = [1, 1]} : vector<16x32xf32> to vector<8x32xf32>
    %203 = vector.extract_strided_slice %200 {offsets = [0, 0], sizes = [8, 32], strides = [1, 1]} : vector<16x32xf32> to vector<8x32xf32>
    %204 = vector.extract_strided_slice %5 {offsets = [0, 0], sizes = [1, 8], strides = [1, 1]} : vector<2x8xf32> to vector<1x8xf32>
    %205 = vector.extract_strided_slice %201 {offsets = [0, 0], sizes = [8, 16], strides = [1, 1]} : vector<8x32xf32> to vector<8x16xf32>
    %206 = vector.extract_strided_slice %202 {offsets = [0, 0], sizes = [8, 16], strides = [1, 1]} : vector<8x32xf32> to vector<8x16xf32>
    %207 = tpu.transpose %206, [1, 0] : vector<8x16xf32> -> vector<16x8xf32>
    %cst_84 = arith.constant dense<0.000000e+00> : vector<8x8xf32>
    %208 = tpu.matmul %205, %207, %cst_84 {dimension_numbers = #tpu.dot_dimension_numbers<[1], [0], [0], [1], [0, 0, 1, 1], [], []>} : vector<8x16xf32>, vector<16x8xf32>, vector<8x8xf32> -> vector<8x8xf32>
    %cst_85 = arith.constant 2.500000e-01 : f32
    %209 = vector.broadcast %cst_85 : f32 to vector<8x8xf32>
    %210 = arith.mulf %208, %209 : vector<8x8xf32>
    %211 = vector.broadcast %204 : vector<1x8xf32> to vector<8x8xf32>
    %212 = arith.addf %210, %211 : vector<8x8xf32>
    %cst_86 = arith.constant dense<0xFF800000> : vector<8xf32>
    %213 = vector.multi_reduction <maximumf>, %212, %cst_86 [1] : vector<8x8xf32> to vector<8xf32>
    %214 = vector.shape_cast %213 : vector<8xf32> to vector<8x1xf32>
    %215 = vector.broadcast %214 : vector<8x1xf32> to vector<8x8xf32>
    %216 = arith.subf %212, %215 : vector<8x8xf32>
    %217 = math.exp %216 : vector<8x8xf32>
    %cst_87 = arith.constant dense<0.000000e+00> : vector<8xf32>
    %218 = vector.multi_reduction <add>, %217, %cst_87 [1] : vector<8x8xf32> to vector<8xf32>
    %219 = vector.shape_cast %218 : vector<8xf32> to vector<8x1xf32>
    %220 = vector.broadcast %219 : vector<8x1xf32> to vector<8x8xf32>
    %221 = arith.divf %217, %220 : vector<8x8xf32>
    %222 = vector.extract_strided_slice %203 {offsets = [0, 0], sizes = [8, 16], strides = [1, 1]} : vector<8x32xf32> to vector<8x16xf32>
    %cst_88 = arith.constant dense<0.000000e+00> : vector<8x16xf32>
    %223 = tpu.matmul %221, %222, %cst_88 {dimension_numbers = #tpu.dot_dimension_numbers<[1], [0], [0], [1], [0, 0, 1, 1], [], []>} : vector<8x8xf32>, vector<8x16xf32>, vector<8x16xf32> -> vector<8x16xf32>
    %224 = vector.extract_strided_slice %201 {offsets = [0, 16], sizes = [8, 16], strides = [1, 1]} : vector<8x32xf32> to vector<8x16xf32>
    %225 = vector.extract_strided_slice %202 {offsets = [0, 16], sizes = [8, 16], strides = [1, 1]} : vector<8x32xf32> to vector<8x16xf32>
    %226 = tpu.transpose %225, [1, 0] : vector<8x16xf32> -> vector<16x8xf32>
    %cst_89 = arith.constant dense<0.000000e+00> : vector<8x8xf32>
    %227 = tpu.matmul %224, %226, %cst_89 {dimension_numbers = #tpu.dot_dimension_numbers<[1], [0], [0], [1], [0, 0, 1, 1], [], []>} : vector<8x16xf32>, vector<16x8xf32>, vector<8x8xf32> -> vector<8x8xf32>
    %cst_90 = arith.constant 2.500000e-01 : f32
    %228 = vector.broadcast %cst_90 : f32 to vector<8x8xf32>
    %229 = arith.mulf %227, %228 : vector<8x8xf32>
    %230 = vector.broadcast %204 : vector<1x8xf32> to vector<8x8xf32>
    %231 = arith.addf %229, %230 : vector<8x8xf32>
    %cst_91 = arith.constant dense<0xFF800000> : vector<8xf32>
    %232 = vector.multi_reduction <maximumf>, %231, %cst_91 [1] : vector<8x8xf32> to vector<8xf32>
    %233 = vector.shape_cast %232 : vector<8xf32> to vector<8x1xf32>
    %234 = vector.broadcast %233 : vector<8x1xf32> to vector<8x8xf32>
    %235 = arith.subf %231, %234 : vector<8x8xf32>
    %236 = math.exp %235 : vector<8x8xf32>
    %cst_92 = arith.constant dense<0.000000e+00> : vector<8xf32>
    %237 = vector.multi_reduction <add>, %236, %cst_92 [1] : vector<8x8xf32> to vector<8xf32>
    %238 = vector.shape_cast %237 : vector<8xf32> to vector<8x1xf32>
    %239 = vector.broadcast %238 : vector<8x1xf32> to vector<8x8xf32>
    %240 = arith.divf %236, %239 : vector<8x8xf32>
    %241 = vector.extract_strided_slice %203 {offsets = [0, 16], sizes = [8, 16], strides = [1, 1]} : vector<8x32xf32> to vector<8x16xf32>
    %cst_93 = arith.constant dense<0.000000e+00> : vector<8x16xf32>
    %242 = tpu.matmul %240, %241, %cst_93 {dimension_numbers = #tpu.dot_dimension_numbers<[1], [0], [0], [1], [0, 0, 1, 1], [], []>} : vector<8x8xf32>, vector<8x16xf32>, vector<8x16xf32> -> vector<8x16xf32>
    %243 = tpu.concatenate %223, %242 in 1 : vector<8x16xf32>, vector<8x16xf32> -> vector<8x32xf32>
    %244 = vector.extract_strided_slice %198 {offsets = [8, 0], sizes = [8, 32], strides = [1, 1]} : vector<16x32xf32> to vector<8x32xf32>
    %245 = vector.extract_strided_slice %199 {offsets = [8, 0], sizes = [8, 32], strides = [1, 1]} : vector<16x32xf32> to vector<8x32xf32>
    %246 = vector.extract_strided_slice %200 {offsets = [8, 0], sizes = [8, 32], strides = [1, 1]} : vector<16x32xf32> to vector<8x32xf32>
    %247 = vector.extract_strided_slice %5 {offsets = [1, 0], sizes = [1, 8], strides = [1, 1]} : vector<2x8xf32> to vector<1x8xf32>
    %248 = vector.extract_strided_slice %244 {offsets = [0, 0], sizes = [8, 16], strides = [1, 1]} : vector<8x32xf32> to vector<8x16xf32>
    %249 = vector.extract_strided_slice %245 {offsets = [0, 0], sizes = [8, 16], strides = [1, 1]} : vector<8x32xf32> to vector<8x16xf32>
    %250 = tpu.transpose %249, [1, 0] : vector<8x16xf32> -> vector<16x8xf32>
    %cst_94 = arith.constant dense<0.000000e+00> : vector<8x8xf32>
    %251 = tpu.matmul %248, %250, %cst_94 {dimension_numbers = #tpu.dot_dimension_numbers<[1], [0], [0], [1], [0, 0, 1, 1], [], []>} : vector<8x16xf32>, vector<16x8xf32>, vector<8x8xf32> -> vector<8x8xf32>
    %cst_95 = arith.constant 2.500000e-01 : f32
    %252 = vector.broadcast %cst_95 : f32 to vector<8x8xf32>
    %253 = arith.mulf %251, %252 : vector<8x8xf32>
    %254 = vector.broadcast %247 : vector<1x8xf32> to vector<8x8xf32>
    %255 = arith.addf %253, %254 : vector<8x8xf32>
    %cst_96 = arith.constant dense<0xFF800000> : vector<8xf32>
    %256 = vector.multi_reduction <maximumf>, %255, %cst_96 [1] : vector<8x8xf32> to vector<8xf32>
    %257 = vector.shape_cast %256 : vector<8xf32> to vector<8x1xf32>
    %258 = vector.broadcast %257 : vector<8x1xf32> to vector<8x8xf32>
    %259 = arith.subf %255, %258 : vector<8x8xf32>
    %260 = math.exp %259 : vector<8x8xf32>
    %cst_97 = arith.constant dense<0.000000e+00> : vector<8xf32>
    %261 = vector.multi_reduction <add>, %260, %cst_97 [1] : vector<8x8xf32> to vector<8xf32>
    %262 = vector.shape_cast %261 : vector<8xf32> to vector<8x1xf32>
    %263 = vector.broadcast %262 : vector<8x1xf32> to vector<8x8xf32>
    %264 = arith.divf %260, %263 : vector<8x8xf32>
    %265 = vector.extract_strided_slice %246 {offsets = [0, 0], sizes = [8, 16], strides = [1, 1]} : vector<8x32xf32> to vector<8x16xf32>
    %cst_98 = arith.constant dense<0.000000e+00> : vector<8x16xf32>
    %266 = tpu.matmul %264, %265, %cst_98 {dimension_numbers = #tpu.dot_dimension_numbers<[1], [0], [0], [1], [0, 0, 1, 1], [], []>} : vector<8x8xf32>, vector<8x16xf32>, vector<8x16xf32> -> vector<8x16xf32>
    %267 = vector.extract_strided_slice %244 {offsets = [0, 16], sizes = [8, 16], strides = [1, 1]} : vector<8x32xf32> to vector<8x16xf32>
    %268 = vector.extract_strided_slice %245 {offsets = [0, 16], sizes = [8, 16], strides = [1, 1]} : vector<8x32xf32> to vector<8x16xf32>
    %269 = tpu.transpose %268, [1, 0] : vector<8x16xf32> -> vector<16x8xf32>
    %cst_99 = arith.constant dense<0.000000e+00> : vector<8x8xf32>
    %270 = tpu.matmul %267, %269, %cst_99 {dimension_numbers = #tpu.dot_dimension_numbers<[1], [0], [0], [1], [0, 0, 1, 1], [], []>} : vector<8x16xf32>, vector<16x8xf32>, vector<8x8xf32> -> vector<8x8xf32>
    %cst_100 = arith.constant 2.500000e-01 : f32
    %271 = vector.broadcast %cst_100 : f32 to vector<8x8xf32>
    %272 = arith.mulf %270, %271 : vector<8x8xf32>
    %273 = vector.broadcast %247 : vector<1x8xf32> to vector<8x8xf32>
    %274 = arith.addf %272, %273 : vector<8x8xf32>
    %cst_101 = arith.constant dense<0xFF800000> : vector<8xf32>
    %275 = vector.multi_reduction <maximumf>, %274, %cst_101 [1] : vector<8x8xf32> to vector<8xf32>
    %276 = vector.shape_cast %275 : vector<8xf32> to vector<8x1xf32>
    %277 = vector.broadcast %276 : vector<8x1xf32> to vector<8x8xf32>
    %278 = arith.subf %274, %277 : vector<8x8xf32>
    %279 = math.exp %278 : vector<8x8xf32>
    %cst_102 = arith.constant dense<0.000000e+00> : vector<8xf32>
    %280 = vector.multi_reduction <add>, %279, %cst_102 [1] : vector<8x8xf32> to vector<8xf32>
    %281 = vector.shape_cast %280 : vector<8xf32> to vector<8x1xf32>
    %282 = vector.broadcast %281 : vector<8x1xf32> to vector<8x8xf32>
    %283 = arith.divf %279, %282 : vector<8x8xf32>
    %284 = vector.extract_strided_slice %246 {offsets = [0, 16], sizes = [8, 16], strides = [1, 1]} : vector<8x32xf32> to vector<8x16xf32>
    %cst_103 = arith.constant dense<0.000000e+00> : vector<8x16xf32>
    %285 = tpu.matmul %283, %284, %cst_103 {dimension_numbers = #tpu.dot_dimension_numbers<[1], [0], [0], [1], [0, 0, 1, 1], [], []>} : vector<8x8xf32>, vector<8x16xf32>, vector<8x16xf32> -> vector<8x16xf32>
    %286 = tpu.concatenate %266, %285 in 1 : vector<8x16xf32>, vector<8x16xf32> -> vector<8x32xf32>
    %287 = tpu.concatenate %243, %286 in 0 : vector<8x32xf32>, vector<8x32xf32> -> vector<16x32xf32>
    %c1_104 = arith.constant 1 : index
    %c0_105 = arith.constant 0 : index
    %c0_106 = arith.constant 0 : index
    %288 = vector.load %arg4[%c1_104, %c0_105, %c0_106] : memref<2x32x32xf32, #tpu.memory_space<vmem>>, vector<1x32x32xf32>
    %289 = vector.shape_cast %288 : vector<1x32x32xf32> to vector<32x32xf32>
    %cst_107 = arith.constant dense<0.000000e+00> : vector<16x32xf32>
    %290 = tpu.matmul %287, %289, %cst_107 {dimension_numbers = #tpu.dot_dimension_numbers<[1], [0], [0], [1], [0, 0, 1, 1], [], []>} : vector<16x32xf32>, vector<32x32xf32>, vector<16x32xf32> -> vector<16x32xf32>
    %c1_108 = arith.constant 1 : index
    %c0_109 = arith.constant 0 : index
    %c0_110 = arith.constant 0 : index
    %291 = vector.load %arg5[%c1_108, %c0_109, %c0_110] : memref<2x1x32xf32, #tpu.memory_space<vmem>>, vector<1x1x32xf32>
    %292 = vector.shape_cast %291 : vector<1x1x32xf32> to vector<1x32xf32>
    %293 = vector.broadcast %292 : vector<1x32xf32> to vector<16x32xf32>
    %294 = arith.addf %290, %293 : vector<16x32xf32>
    %295 = arith.addf %190, %294 : vector<16x32xf32>
    %c1_111 = arith.constant 1 : index
    %c0_112 = arith.constant 0 : index
    %c0_113 = arith.constant 0 : index
    %296 = vector.load %arg6[%c1_111, %c0_112, %c0_113] : memref<2x1x32xf32, #tpu.memory_space<vmem>>, vector<1x1x32xf32>
    %297 = vector.shape_cast %296 : vector<1x1x32xf32> to vector<1x32xf32>
    %c1_114 = arith.constant 1 : index
    %c0_115 = arith.constant 0 : index
    %c0_116 = arith.constant 0 : index
    %298 = vector.load %arg7[%c1_114, %c0_115, %c0_116] : memref<2x1x32xf32, #tpu.memory_space<vmem>>, vector<1x1x32xf32>
    %299 = vector.shape_cast %298 : vector<1x1x32xf32> to vector<1x32xf32>
    %cst_117 = arith.constant dense<0.000000e+00> : vector<16xf32>
    %300 = vector.multi_reduction <add>, %295, %cst_117 [1] : vector<16x32xf32> to vector<16xf32>
    %301 = vector.shape_cast %300 : vector<16xf32> to vector<16x1xf32>
    %cst_118 = arith.constant 3.200000e+01 : f32
    %302 = vector.broadcast %cst_118 : f32 to vector<16x1xf32>
    %303 = arith.divf %301, %302 : vector<16x1xf32>
    %304 = vector.broadcast %303 : vector<16x1xf32> to vector<16x32xf32>
    %305 = arith.subf %295, %304 : vector<16x32xf32>
    %306 = arith.mulf %305, %305 : vector<16x32xf32>
    %cst_119 = arith.constant dense<0.000000e+00> : vector<16xf32>
    %307 = vector.multi_reduction <add>, %306, %cst_119 [1] : vector<16x32xf32> to vector<16xf32>
    %308 = vector.shape_cast %307 : vector<16xf32> to vector<16x1xf32>
    %cst_120 = arith.constant 3.200000e+01 : f32
    %309 = vector.broadcast %cst_120 : f32 to vector<16x1xf32>
    %310 = arith.divf %308, %309 : vector<16x1xf32>
    %311 = vector.broadcast %303 : vector<16x1xf32> to vector<16x32xf32>
    %312 = arith.subf %295, %311 : vector<16x32xf32>
    %cst_121 = arith.constant 9.99999996E-13 : f32
    %313 = vector.broadcast %cst_121 : f32 to vector<16x1xf32>
    %314 = arith.addf %310, %313 : vector<16x1xf32>
    %315 = math.rsqrt %314 : vector<16x1xf32>
    %316 = vector.broadcast %315 : vector<16x1xf32> to vector<16x32xf32>
    %317 = arith.mulf %312, %316 : vector<16x32xf32>
    %318 = vector.broadcast %297 : vector<1x32xf32> to vector<16x32xf32>
    %319 = arith.mulf %317, %318 : vector<16x32xf32>
    %320 = vector.broadcast %299 : vector<1x32xf32> to vector<16x32xf32>
    %321 = arith.addf %319, %320 : vector<16x32xf32>
    %c1_122 = arith.constant 1 : index
    %c0_123 = arith.constant 0 : index
    %c0_124 = arith.constant 0 : index
    %322 = vector.load %arg8[%c1_122, %c0_123, %c0_124] : memref<2x32x64xf32, #tpu.memory_space<vmem>>, vector<1x32x64xf32>
    %323 = vector.shape_cast %322 : vector<1x32x64xf32> to vector<32x64xf32>
    %cst_125 = arith.constant dense<0.000000e+00> : vector<16x64xf32>
    %324 = tpu.matmul %321, %323, %cst_125 {dimension_numbers = #tpu.dot_dimension_numbers<[1], [0], [0], [1], [0, 0, 1, 1], [], []>} : vector<16x32xf32>, vector<32x64xf32>, vector<16x64xf32> -> vector<16x64xf32>
    %c1_126 = arith.constant 1 : index
    %c0_127 = arith.constant 0 : index
    %c0_128 = arith.constant 0 : index
    %325 = vector.load %arg9[%c1_126, %c0_127, %c0_128] : memref<2x1x64xf32, #tpu.memory_space<vmem>>, vector<1x1x64xf32>
    %326 = vector.shape_cast %325 : vector<1x1x64xf32> to vector<1x64xf32>
    %327 = vector.broadcast %326 : vector<1x64xf32> to vector<16x64xf32>
    %328 = arith.addf %324, %327 : vector<16x64xf32>
    %329 = arith.mulf %328, %328 : vector<16x64xf32>
    %330 = arith.mulf %328, %329 : vector<16x64xf32>
    %cst_129 = arith.constant 4.471500e-02 : f32
    %331 = vector.broadcast %cst_129 : f32 to vector<16x64xf32>
    %332 = arith.mulf %331, %330 : vector<16x64xf32>
    %333 = arith.addf %328, %332 : vector<16x64xf32>
    %cst_130 = arith.constant 0.797884583 : f32
    %334 = vector.broadcast %cst_130 : f32 to vector<16x64xf32>
    %335 = arith.mulf %334, %333 : vector<16x64xf32>
    %336 = math.tanh %335 : vector<16x64xf32>
    %cst_131 = arith.constant 1.000000e+00 : f32
    %337 = vector.broadcast %cst_131 : f32 to vector<16x64xf32>
    %338 = arith.addf %337, %336 : vector<16x64xf32>
    %cst_132 = arith.constant 5.000000e-01 : f32
    %339 = vector.broadcast %cst_132 : f32 to vector<16x64xf32>
    %340 = arith.mulf %339, %338 : vector<16x64xf32>
    %341 = arith.mulf %328, %340 : vector<16x64xf32>
    %c1_133 = arith.constant 1 : index
    %c0_134 = arith.constant 0 : index
    %c0_135 = arith.constant 0 : index
    %342 = vector.load %arg10[%c1_133, %c0_134, %c0_135] : memref<2x64x32xf32, #tpu.memory_space<vmem>>, vector<1x64x32xf32>
    %343 = vector.shape_cast %342 : vector<1x64x32xf32> to vector<64x32xf32>
    %cst_136 = arith.constant dense<0.000000e+00> : vector<16x32xf32>
    %344 = tpu.matmul %341, %343, %cst_136 {dimension_numbers = #tpu.dot_dimension_numbers<[1], [0], [0], [1], [0, 0, 1, 1], [], []>} : vector<16x64xf32>, vector<64x32xf32>, vector<16x32xf32> -> vector<16x32xf32>
    %c1_137 = arith.constant 1 : index
    %c0_138 = arith.constant 0 : index
    %c0_139 = arith.constant 0 : index
    %345 = vector.load %arg11[%c1_137, %c0_138, %c0_139] : memref<2x1x32xf32, #tpu.memory_space<vmem>>, vector<1x1x32xf32>
    %346 = vector.shape_cast %345 : vector<1x1x32xf32> to vector<1x32xf32>
    %347 = vector.broadcast %346 : vector<1x32xf32> to vector<16x32xf32>
    %348 = arith.addf %344, %347 : vector<16x32xf32>
    %349 = arith.addf %321, %348 : vector<16x32xf32>
    %c1_140 = arith.constant 1 : index
    %c0_141 = arith.constant 0 : index
    %c0_142 = arith.constant 0 : index
    %350 = vector.load %arg12[%c1_140, %c0_141, %c0_142] : memref<2x1x32xf32, #tpu.memory_space<vmem>>, vector<1x1x32xf32>
    %351 = vector.shape_cast %350 : vector<1x1x32xf32> to vector<1x32xf32>
    %c1_143 = arith.constant 1 : index
    %c0_144 = arith.constant 0 : index
    %c0_145 = arith.constant 0 : index
    %352 = vector.load %arg13[%c1_143, %c0_144, %c0_145] : memref<2x1x32xf32, #tpu.memory_space<vmem>>, vector<1x1x32xf32>
    %353 = vector.shape_cast %352 : vector<1x1x32xf32> to vector<1x32xf32>
    %cst_146 = arith.constant dense<0.000000e+00> : vector<16xf32>
    %354 = vector.multi_reduction <add>, %349, %cst_146 [1] : vector<16x32xf32> to vector<16xf32>
    %355 = vector.shape_cast %354 : vector<16xf32> to vector<16x1xf32>
    %cst_147 = arith.constant 3.200000e+01 : f32
    %356 = vector.broadcast %cst_147 : f32 to vector<16x1xf32>
    %357 = arith.divf %355, %356 : vector<16x1xf32>
    %358 = vector.broadcast %357 : vector<16x1xf32> to vector<16x32xf32>
    %359 = arith.subf %349, %358 : vector<16x32xf32>
    %360 = arith.mulf %359, %359 : vector<16x32xf32>
    %cst_148 = arith.constant dense<0.000000e+00> : vector<16xf32>
    %361 = vector.multi_reduction <add>, %360, %cst_148 [1] : vector<16x32xf32> to vector<16xf32>
    %362 = vector.shape_cast %361 : vector<16xf32> to vector<16x1xf32>
    %cst_149 = arith.constant 3.200000e+01 : f32
    %363 = vector.broadcast %cst_149 : f32 to vector<16x1xf32>
    %364 = arith.divf %362, %363 : vector<16x1xf32>
    %365 = vector.broadcast %357 : vector<16x1xf32> to vector<16x32xf32>
    %366 = arith.subf %349, %365 : vector<16x32xf32>
    %cst_150 = arith.constant 9.99999996E-13 : f32
    %367 = vector.broadcast %cst_150 : f32 to vector<16x1xf32>
    %368 = arith.addf %364, %367 : vector<16x1xf32>
    %369 = math.rsqrt %368 : vector<16x1xf32>
    %370 = vector.broadcast %369 : vector<16x1xf32> to vector<16x32xf32>
    %371 = arith.mulf %366, %370 : vector<16x32xf32>
    %372 = vector.broadcast %351 : vector<1x32xf32> to vector<16x32xf32>
    %373 = arith.mulf %371, %372 : vector<16x32xf32>
    %374 = vector.broadcast %353 : vector<1x32xf32> to vector<16x32xf32>
    %375 = arith.addf %373, %374 : vector<16x32xf32>
    %376 = vector.extract_strided_slice %1 {offsets = [0, 0], sizes = [1, 8], strides = [1, 1]} : vector<2x8xf32> to vector<1x8xf32>
    %377 = vector.extract_strided_slice %375 {offsets = [0, 0], sizes = [8, 32], strides = [1, 1]} : vector<16x32xf32> to vector<8x32xf32>
    %cst_151 = arith.constant dense<0.000000e+00> : vector<1x32xf32>
    %378 = tpu.matmul %376, %377, %cst_151 {dimension_numbers = #tpu.dot_dimension_numbers<[1], [0], [0], [1], [0, 0, 1, 1], [], []>} : vector<1x8xf32>, vector<8x32xf32>, vector<1x32xf32> -> vector<1x32xf32>
    %379 = vector.extract_strided_slice %1 {offsets = [1, 0], sizes = [1, 8], strides = [1, 1]} : vector<2x8xf32> to vector<1x8xf32>
    %380 = vector.extract_strided_slice %375 {offsets = [8, 0], sizes = [8, 32], strides = [1, 1]} : vector<16x32xf32> to vector<8x32xf32>
    %cst_152 = arith.constant dense<0.000000e+00> : vector<1x32xf32>
    %381 = tpu.matmul %379, %380, %cst_152 {dimension_numbers = #tpu.dot_dimension_numbers<[1], [0], [0], [1], [0, 0, 1, 1], [], []>} : vector<1x8xf32>, vector<8x32xf32>, vector<1x32xf32> -> vector<1x32xf32>
    %382 = tpu.concatenate %378, %381 in 0 : vector<1x32xf32>, vector<1x32xf32> -> vector<2x32xf32>
    %cst_153 = arith.constant dense<0.000000e+00> : vector<2xf32>
    %383 = vector.multi_reduction <add>, %1, %cst_153 [1] : vector<2x8xf32> to vector<2xf32>
    %384 = vector.shape_cast %383 : vector<2xf32> to vector<2x1xf32>
    %cst_154 = arith.constant 9.99999971E-10 : f32
    %385 = vector.broadcast %cst_154 : f32 to vector<2x1xf32>
    %386 = arith.maximumf %384, %385 : vector<2x1xf32>
    %387 = vector.broadcast %386 : vector<2x1xf32> to vector<2x32xf32>
    %388 = arith.divf %382, %387 : vector<2x32xf32>
    %c0_155 = arith.constant 0 : index
    %c0_156 = arith.constant 0 : index
    %389 = vector.load %arg14[%c0_155, %c0_156] : memref<2x32xf32, #tpu.memory_space<vmem>>, vector<2x32xf32>
    tpu.vector_store %arg14[%c0_155, %c0_156], %388 {strides = array<i32>} : memref<2x32xf32, #tpu.memory_space<vmem>>, vector<2x32xf32>,
    return
  }
}

</mosaic_0001>

<bundles_post_ra>
// kernel: tpu_custom_call.1
= control target key start
LH: loop header
LB: loop body
LE: loop exit
PB: predicated region body
PF: predicated region fallthrough
CT: control target
= control target key end

     0   :  { %19 = vsyncpa [#allocation3], 0  ;;  %s3650_s0 = inlined_call_operand.hbm [shape: f32[16,32], index: 0, kind: input, shape index: {}]   ;;  %s3651_s1 = inlined_call_operand.vmem [shape: f32[2,8], index: 1, kind: input, shape index: {}]   ;;  %s3652_s2 = inlined_call_operand.vmem [shape: f32[2,32,96], index: 2, kind: input, shape index: {}]   ;;  %s3653_s3 = inlined_call_operand.vmem [shape: f32[2,1,96], index: 3, kind: input, shape index: {}]   ;;  %s3654_s4 = inlined_call_operand.vmem [shape: f32[2,32,32], index: 4, kind: input, shape index: {}]   ;;  %s3655_s5 = inlined_call_operand.vmem [shape: f32[2,1,32], index: 5, kind: input, shape index: {}]   ;;  %s3656_s6 = inlined_call_operand.vmem [shape: f32[2,1,32], index: 6, kind: input, shape index: {}]   ;;  %s3657_s7 = inlined_call_operand.vmem [shape: f32[2,1,32], index: 7, kind: input, shape index: {}]   ;;  %s3658_s8 = inlined_call_operand.vmem [shape: f32[2,32,64], index: 8, kind: input, shape index: {}]   ;;  %s3659_s9 = inlined_call_operand.vmem [shape: f32[2,1,64], index: 9, kind: input, shape index: {}]   ;;  %s3660_s10 = inlined_call_operand.vmem [shape: f32[2,64,32], index: 10, kind: input, shape index: {}]   ;;  %s3661_s11 = inlined_call_operand.vmem [shape: f32[2,1,32], index: 11, kind: input, shape index: {}]   ;;  %s3662_s12 = inlined_call_operand.vmem [shape: f32[2,1,32], index: 12, kind: input, shape index: {}]   ;;  %s3663_s13 = inlined_call_operand.vmem [shape: f32[2,1,32], index: 13, kind: input, shape index: {}]   ;;  %s3664_s14 = inlined_call_operand.hbm [shape: f32[2,32], index: 14, kind: output, shape index: {}]  }
   0x1   :  { %20 = vsyncpa [#allocation4], 0  ;;  %s3154_s29 = smov [#allocation2]   ;;  %s3106_s17 = scalar_lea.hbm %s3650_s0, 256 }
   0x2   :  { %s26_s30 = sshll.u32 %s3154_s29, 4  ;;  %p3107_p0 = scmp.ne.s32.totalorder %s3650_s0, %s3106_s17  ;;  %s27_s30 = int_to_ptr.vmem [resolvable:$true] %s26_s30 }
   0x3   :  { %p3110_p1 = scmp.lt.u32.totalorder %s3106_s17, %s3650_s0 }
   0x5   :  { %p3112_p2 = pnand %p3110_p1, %p3107_p0 }
   0x7   :  { %3115 = shalt.err (!%p3112_p2)
}
   0x8   :  { %s3116_s22 = scalar_lea.vmem %s27_s30, 256  ;;  %p3121_p4 = scmp.lt.s32.totalorder %s27_s30, %s27_s30 }
   0x9   :  { %p3117_p3 = scmp.ne.s32.totalorder %s27_s30, %s3116_s22  ;;  %p3122_p5 = scmp.lt.s32.totalorder %s3116_s22, %s3116_s22 }
   0xb   :  { %p3123_p6 = por %p3122_p5, %p3121_p4 }
   0xd   :  { %p3124_p7 = pnand %p3123_p6, %p3117_p3 }
   0xf   :  { %3127 = shalt.err (!%p3124_p7)
}
  0x10   :  { %s3155_s23 = smov 128   ;;  %s3156_s24 = smov 8  }
  0x11   :  { %32 = dma.hbm_to_vmem [thread:$0]  %s3650_s0, 256, %s27_s30, [#allocation3], %s3155_s23, %s3155_s23, %s3156_s24  }
  0x12   :  { %3150 = dma.done.wait [#allocation3], 256  }
  0x13   :  { %3151 = vsyncadd [#allocation3], 4294967040  ;;  %vm78_vm0 = vcmask 261120   ;;  %v67_v0 = vld [vmem:[%s3652_s2] sm:$0xff]  ;;  %v68_v1 = vld [vmem:[%s3652_s2 + $0x8] sm:$0xff]  ;;  %v3157_v8 = vmov 0.0   ;;  %v239_v19 = vlaneseq }
  0x14   :  { %v69_v2 = vld [vmem:[%s3652_s2 + $0x10] sm:$0xff]  ;;  %v2955_v3 = vpack.c.bf16 %v68_v1, %v67_v0  ;;  %v70_v4 = vld [vmem:[%s3652_s2 + $0x18] sm:$0xff]  ;;  %v3265_v5 = vld [vmem:[#allocation2] sm:$0xff]  ;;  %2772 = vmatprep.subr.mxu1 %v3157_v8  ;;  %vm3158_vm1 = vmmov 0   ;;  %s3159_s20 = smov 64   ;;  %s3160_s21 = smov 96  }
  0x15   :  { %v2959_v6 = vpack.c.bf16 %v70_v4, %v69_v2  ;;  %2769 = vmatprep.mubr.msk.f32.mxu0 %vm78_vm0, %v3265_v5  ;;  %v3269_v7 = vld [vmem:[#allocation2 + $0x8] sm:$0xff]  ;;  %2774 = vmatprep.mubr.msk.f32.mxu1 %vm3158_vm1, %v3157_v8  ;;  %v2583_v9 = vld [vmem:[%s3653_s3] ss:$0 sm:$0xff]  ;;  %s3161_s22 = smov 80   ;;  %s3162_s23 = smov 112   ;;  %vm163_vm2 = vcmask 130048  }
  0x16   :  { %2956 = vmatprep.subr.bf16.mxu0 %v2955_v3  ;;  %v64_v20 = vld [vmem:[%s3651_s1] sm:$0x3]  ;;  %v240_v22 = vshrl.u32 %v239_v19, 7  ;;  %vm244_vm3 = vcmask 64512   ;;  %s3163_s26 = smov 48   ;;  %s3164_s0 = smov 16  }
  0x17   :  { %2958 = vmatpush3.bf16.msra.mxu0 %v2955_v3  ;;  %v65_v21 = vsub.f32 1.0, %v64_v20  ;;  %vm1110_vm4 = vcmask 523264   ;;  %vm2559_vm5 = vcmask 58368   ;;  %vm2557_vm6 = vcmask 1040384  }
  0x18   :  { %2960 = vmatprep.subr.bf16.mxu0 %v2959_v6  ;;  %v241_v24 = vsub.s32 0, %v240_v22  ;;  %v584_v33 = vsub.s32 1, %v240_v22  ;;  %vm2566_vm7 = vcmask 254976  }
  0x19   :  { %v66_v23 = vmul.f32 -1e+09, %v65_v21 }
  0x1b   :  { %2962 = vmatpush3.bf16.msra.mxu0 %v2959_v6  ;;  %v3305_v25 = vrot.slane %v66_v23, %v241_v24  ;;  %v3311_v35 = vrot.slane %v66_v23, %v584_v33 }
  0x1c   :  { %2792 = vmatprep.subr.mxu0 %v3157_v8 }
  0x1e   :  { %2770 = vmatmul.mubr.msk.f32.vlgmr.msra.gmra.mrb[0].mxu0 %vm78_vm0, %v3269_v7 }
  0x1f   :  { %2794 = vmatprep.mubr.msk.f32.mxu0 %vm3158_vm1, %v3157_v8 }
  0xf1   :  { %v2771_v10 = vpop.f32.mrb[0].mxu0 }
  0xf2   :  { %v151_v11 = vpop.f32.mrb[1].mxu0  ;;  %v3286_v13 = vadd.f32 %v2771_v10, %v2583_v9 }
  0xf3   :  { %v152_v12 = vadd.f32 %v2583_v9, %v151_v11 }
  0xf5   :  { %256 = vrot.lane.b32.xlu1 %v152_v12, %s3159_s20  ;;  %161 = vrot.lane.b32.xlu0 %v152_v12, %s3160_s21 }
  0xf9   :  { %334 = vrot.lane.b32.xlu1 %v152_v12, %s3161_s22 }
  0xfd   :  { %332 = vrot.lane.b32.xlu1 %v152_v12, %s3162_s23 }
 0x101   :  { %505 = vrot.lane.b32.xlu1 %v3286_v13, %s3160_s21 }
 0x167   :  { %v257_v14 = vpop.permute.xlu1 %256  ;;  %v162_v15 = vpop.permute.xlu0 %161 }
 0x168   :  { %2773 = vmatpush3.xpose.msk.msra.mxu1 %vm163_vm2, %v162_v15 }
 0x169   :  { %2777 = vmatprep.subr.mxu1 %v3157_v8 }
 0x16b   :  { %v335_v16 = vpop.permute.xlu1 %334  ;;  %2775 = vmatmul.mubr.msk.f32.vlgmr.msra.gmra.mrb[0].mxu1 %vm163_vm2, %v152_v12 }
 0x16c   :  { %2778 = vmatpush3.msra.mxu1 %v257_v14  ;;  %2779 = vmatprep.mubr.msk.f32.mxu1 %vm3158_vm1, %v3157_v8 }
 0x16d   :  { %2782 = vmatprep.subr.mxu1 %v3157_v8 }
 0x16f   :  { %v333_v17 = vpop.permute.xlu1 %332 }
 0x173   :  { %v506_v18 = vpop.permute.xlu1 %505 }
 0x174   :  { %2793 = vmatpush3.xpose.msk.msra.mxu0 %vm163_vm2, %v506_v18 }
 0x175   :  { %2802 = vmatprep.subr.mxu0 %v3157_v8 }
 0x177   :  { %2795 = vmatmul.mubr.msk.f32.vlgmr.msra.gmra.mrb[2].mxu0 %vm163_vm2, %v3286_v13 }
 0x178   :  { %2804 = vmatprep.mubr.msk.f32.mxu0 %vm3158_vm1, %v3157_v8 }
 0x23e   :  { %v234_v26 = vpop.f32.mrb[0].mxu1 }
 0x23f   :  { %v238_v27 = vmul.f32 0.25, %v234_v26  ;;  %v2776_v28 = vpop.f32.mrb[1].mxu1 }
 0x240   :  { %v847_v28 = vld [vmem:[%s3654_s4 + $0x8] sm:$0xff] }
 0x241   :  { %v243_v29 = vadd.f32 %v3305_v25, %v238_v27  ;;  %v846_v27 = vld [vmem:[%s3654_s4] sm:$0xff] }
 0x243   :  { %v245_v30 = vsel %vm244_vm3, %v243_v29, -inf }
 0x244   :  { %246 = vmax.xlane.f32.xlu0 %v245_v30  ;;  %v848_v30 = vld [vmem:[%s3654_s4 + $0x10] sm:$0xff] }
 0x24a   :  { %v577_v31 = vpop.f32.mrb[2].mxu0 }
 0x24b   :  { %v2796_v32 = vpop.f32.mrb[3].mxu0  ;;  %v581_v34 = vmul.f32 0.25, %v577_v31  ;;  %v849_v31 = vld [vmem:[%s3654_s4 + $0x18] sm:$0xff] }
 0x24c   :  { %v2967_v32 = vpack.c.bf16 %v849_v31, %v848_v30  ;;  %v1100_v30 = vld [vmem:[%s3660_s10 + $0x28] sm:$0xff] }
 0x24d   :  { %v586_v36 = vadd.f32 %v3311_v35, %v581_v34 }
 0x24f   :  { %v587_v37 = vsel %vm244_vm3, %v586_v36, -inf }
 0x25a   :  { %674 = vrot.lane.b32.xlu0 %v3286_v13, %s3162_s23 }
 0x279   :  { %588 = vmax.xlane.f32.xlu0 %v587_v37 }
 0x28f   :  { %423 = vrot.lane.b32.xlu0 %v152_v12, %s3163_s26 }
 0x2d1   :  { %v247_v38 = vpop.xlane.xlu0 %246 }
 0x2d2   :  { %v248_v39 = vsub.f32 %v243_v29, %v247_v38  ;;  %v2963_v29 = vpack.c.bf16 %v847_v28, %v846_v27  ;;  %v1098_v27 = vld [vmem:[%s3660_s10 + $0x18] sm:$0xff] }
 0x2d4   :  { %v249_v40 = vmul.f32 1.442695, %v248_v39 }
 0x2d5   :  { %v675_v45 = vpop.permute.xlu0 %674 }
 0x2d6   :  { %3047 = vpow2.f32 %v249_v40 }
 0x2e0   :  { %v3048_v41 = vpop.eup %3047 }
 0x2e1   :  { %v251_v42 = vsel %vm244_vm3, %v3048_v41, 0.0 }
 0x2e2   :  { %252 = vadd.xlane.f32.xlu1 %v251_v42 }
 0x2f3   :  { %676 = vrot.lane.b32.xlu1 %v3286_v13, %s3161_s22 }
 0x306   :  { %v589_v47 = vpop.xlane.xlu0 %588 }
 0x307   :  { %v590_v52 = vsub.f32 %v586_v36, %v589_v47 }
 0x309   :  { %v591_v53 = vmul.f32 1.442695, %v590_v52 }
 0x30a   :  { %v424_v49 = vpop.permute.xlu0 %423 }
 0x36f   :  { %v253_v43 = vpop.xlane.xlu1 %252 }
 0x370   :  { %3049 = vrcp.f32 %v253_v43 }
 0x371   :  { %3051 = vpow2.f32 %v591_v53 }
 0x373   :  { %v677_v44 = vpop.permute.xlu1 %676 }
 0x374   :  { %2803 = vmatpush3.xpose.msk.msra.mxu0 %vm163_vm2, %v677_v44  ;;  %v2598_v44 = vld [vmem:[%s3655_s5] ss:$0 sm:$0xff] }
 0x375   :  { %2964 = vmatprep.subr.bf16.mxu0 %v2963_v29 }
 0x377   :  { %2805 = vmatmul.mubr.msk.f32.vlgmr.msra.gmra.mrb[4].mxu0 %vm163_vm2, %v675_v45 }
 0x378   :  { %2966 = vmatpush3.bf16.msra.mxu0 %v2963_v29  ;;  %v1099_v29 = vld [vmem:[%s3660_s10 + $0x20] sm:$0xff] }
 0x379   :  { %2968 = vmatprep.subr.bf16.mxu0 %v2967_v32  ;;  %v2987_v31 = vpack.c.bf16 %v1100_v30, %v1099_v29  ;;  %v2609_v29 = vld [vmem:[%s3662_s12] ss:$0 sm:$0xff] }
 0x37a   :  { %v3050_v46 = vpop.eup %3049 }
 0x37b   :  { %v255_v48 = vmul.f32 %v3050_v46, %v3048_v41  ;;  %v3052_v0 = vpop.eup %3051 }
 0x37c   :  { %v593_v1 = vsel %vm244_vm3, %v3052_v0, 0.0  ;;  %2970 = vmatpush3.bf16.msra.mxu0 %v2967_v32  ;;  %v1101_v32 = vld [vmem:[%s3660_s10 + $0x30] sm:$0xff] }
 0x37d   :  { %2780 = vmatmul.mubr.msk.f32.vlgmr.msra.gmra.mrb[2].mxu1 %vm244_vm3, %v255_v48 }
 0x37e   :  { %2783 = vmatpush3.xpose.msk.msra.mxu1 %vm163_vm2, %v335_v16  ;;  %2784 = vmatprep.mubr.msk.f32.mxu1 %vm3158_vm1, %v3157_v8 }
 0x37f   :  { %2787 = vmatprep.subr.mxu1 %v3157_v8 }
 0x381   :  { %2785 = vmatmul.mubr.msk.f32.vlgmr.msra.gmra.mrb[4].mxu1 %vm163_vm2, %v333_v17 }
 0x382   :  { %2788 = vmatpush3.msra.mxu1 %v424_v49  ;;  %2789 = vmatprep.mubr.msk.f32.mxu1 %vm3158_vm1, %v3157_v8 }
 0x383   :  { %2797 = vmatprep.subr.mxu1 %v3157_v8 }
 0x44a   :  { %v748_v50 = vpop.f32.mrb[4].mxu0 }
 0x44b   :  { %v2806_v51 = vpop.f32.mrb[5].mxu0  ;;  %v752_v57 = vmul.f32 0.25, %v748_v50 }
 0x44d   :  { %v753_v62 = vadd.f32 %v752_v57, %v3311_v35 }
 0x44f   :  { %v754_v63 = vsel %vm244_vm3, %v753_v62, -inf }
 0x450   :  { %v3330_v54 = vpop.f32.mrb[2].mxu1 }
 0x451   :  { %v2781_v55 = vpop.f32.mrb[3].mxu1 }
 0x454   :  { %v406_v56 = vpop.f32.mrb[4].mxu1 }
 0x455   :  { %v410_v58 = vmul.f32 0.25, %v406_v56  ;;  %v2786_v59 = vpop.f32.mrb[5].mxu1 }
 0x457   :  { %v411_v60 = vadd.f32 %v410_v58, %v3305_v25 }
 0x459   :  { %v412_v61 = vsel %vm244_vm3, %v411_v60, -inf }
 0x45a   :  { %413 = vmax.xlane.f32.xlu1 %v412_v61 }
 0x45e   :  { %755 = vmax.xlane.f32.xlu1 %v754_v63 }
 0x462   :  { %594 = vadd.xlane.f32.xlu1 %v593_v1  ;;  %v988_v1 = vld [vmem:[%s3658_s8 + $0x18] sm:$0xff] }
 0x4e7   :  { %v414_v2 = vpop.xlane.xlu1 %413 }
 0x4e8   :  { %v415_v11 = vsub.f32 %v411_v60, %v414_v2 }
 0x4ea   :  { %v416_v12 = vmul.f32 1.442695, %v415_v11 }
 0x4eb   :  { %v756_v3 = vpop.xlane.xlu1 %755 }
 0x4ec   :  { %v757_v4 = vsub.f32 %v753_v62, %v756_v3  ;;  %v986_v62 = vld [vmem:[%s3658_s8 + $0x8] sm:$0xff] }
 0x4ee   :  { %v758_v6 = vmul.f32 1.442695, %v757_v4 }
 0x4ef   :  { %v595_v16 = vpop.xlane.xlu1 %594 }
 0x4f0   :  { %3053 = vpow2.f32 %v758_v6 }
 0x4f1   :  { %3055 = vpow2.f32 %v416_v12 }
 0x4fa   :  { %v3054_v9 = vpop.eup %3053 }
 0x4fb   :  { %v760_v10 = vsel %vm244_vm3, %v3054_v9, 0.0  ;;  %v3056_v14 = vpop.eup %3055 }
 0x4fc   :  { %761 = vadd.xlane.f32.xlu1 %v760_v10  ;;  %v418_v15 = vsel %vm244_vm3, %v3056_v14, 0.0 }
 0x50d   :  { %598 = vrot.lane.b32.xlu1 %v3286_v13, %s3159_s20 }
 0x531   :  { %419 = vadd.xlane.f32.xlu1 %v418_v15 }
 0x542   :  { %765 = vrot.lane.b32.xlu1 %v3286_v13, %s3163_s26 }
 0x589   :  { %v762_v17 = vpop.xlane.xlu1 %761 }
 0x58d   :  { %v599_v18 = vpop.permute.xlu1 %598 }
 0x5be   :  { %v420_v19 = vpop.xlane.xlu1 %419 }
 0x5bf   :  { %3057 = vrcp.f32 %v420_v19 }
 0x5c0   :  { %3059 = vrcp.f32 %v595_v16  ;;  %v2602_v16 = vld [vmem:[%s3657_s7] ss:$0 sm:$0xff] }
 0x5c1   :  { %3061 = vrcp.f32 %v762_v17 }
 0x5c2   :  { %v766_v24 = vpop.permute.xlu1 %765 }
 0x5c9   :  { %v3058_v20 = vpop.eup %3057 }
 0x5ca   :  { %v422_v21 = vmul.f32 %v3058_v20, %v3056_v14  ;;  %v3060_v22 = vpop.eup %3059  ;;  %v2601_v14 = vld [vmem:[%s3656_s6] ss:$0 sm:$0xff] }
 0x5cb   :  { %v597_v23 = vmul.f32 %v3060_v22, %v3052_v0  ;;  %v3062_v13 = vpop.eup %3061  ;;  %v987_v0 = vld [vmem:[%s3658_s8 + $0x10] sm:$0xff] }
 0x5cc   :  { %2790 = vmatmul.mubr.msk.f32.vlgmr.msra.gmra.mrb[6].mxu1 %vm244_vm3, %v422_v21  ;;  %v764_v26 = vmul.f32 %v3062_v13, %v3054_v9  ;;  %v2975_v2 = vpack.c.bf16 %v988_v1, %v987_v0  ;;  %v1096_v13 = vld [vmem:[%s3660_s10 + $0x8] sm:$0xff] }
 0x5cd   :  { %2798 = vmatpush3.msra.mxu1 %v599_v18  ;;  %2799 = vmatprep.mubr.msk.f32.mxu1 %vm3158_vm1, %v3157_v8 }
 0x5ce   :  { %2807 = vmatprep.subr.mxu1 %v3157_v8 }
 0x5d0   :  { %2800 = vmatmul.mubr.msk.f32.vlgmr.msra.gmra.mrb[8].mxu1 %vm244_vm3, %v597_v23  ;;  %v1095_v23 = vld [vmem:[%s3660_s10] sm:$0xff] }
 0x5d1   :  { %2808 = vmatpush3.msra.mxu1 %v766_v24  ;;  %2809 = vmatprep.mubr.msk.f32.mxu1 %vm3158_vm1, %v3157_v8  ;;  %v2979_v24 = vpack.c.bf16 %v1096_v13, %v1095_v23 }
 0x5d3   :  { %2980 = vmatprep.subr.bf16.mxu0 %v2979_v24 }
 0x5d4   :  { %2810 = vmatmul.mubr.msk.f32.vlgmr.msra.gmra.mrb[10].mxu1 %vm244_vm3, %v764_v26  ;;  %v1097_v26 = vld [vmem:[%s3660_s10 + $0x10] sm:$0xff] }
 0x5d5   :  { %v2983_v28 = vpack.c.bf16 %v1098_v27, %v1097_v26 }
 0x69f   :  { %v495_v33 = vpop.f32.mrb[6].mxu1 }
 0x6a0   :  { %500 = vrot.lane.b32.xlu0 %v495_v33, %s3164_s0  ;;  %v2791_v34 = vpop.f32.mrb[7].mxu1  ;;  %v1102_v33 = vld [vmem:[%s3660_s10 + $0x38] sm:$0xff] }
 0x6a1   :  { %v2991_v34 = vpack.c.bf16 %v1102_v33, %v1101_v32  ;;  %v2610_v33 = vld [vmem:[%s3663_s13] ss:$0 sm:$0xff] }
 0x6a3   :  { %v670_v36 = vpop.f32.mrb[8].mxu1 }
 0x6a4   :  { %v2801_v37 = vpop.f32.mrb[9].mxu1 }
 0x6a7   :  { %v837_v38 = vpop.f32.mrb[10].mxu1 }
 0x6a8   :  { %842 = vrot.lane.b32.xlu1 %v837_v38, %s3164_s0  ;;  %v2811_v39 = vpop.f32.mrb[11].mxu1 }
 0x712   :  { %v501_v40 = vpop.permute.xlu0 %500 }
 0x713   :  { %v503_v41 = vsel %vm163_vm2, %v3330_v54, %v501_v40 }
 0x714   :  { %2820 = vmatprep.mubr.msk.f32.mxu0 %vm78_vm0, %v503_v41 }
 0x71a   :  { %v843_v42 = vpop.permute.xlu1 %842 }
 0x71b   :  { %v845_v43 = vsel %vm163_vm2, %v670_v36, %v843_v42  ;;  %v2603_v36 = vld [vmem:[%s3659_s9] ss:$0 sm:$0xff] }
 0x71c   :  { %2821 = vmatmul.mubr.msk.f32.vlgmr.msra.gmra.mrb[6].mxu0 %vm78_vm0, %v845_v43 }
 0x71d   :  { %2982 = vmatpush3.bf16.msra.mxu0 %v2979_v24 }
 0x71e   :  { %2984 = vmatprep.subr.bf16.mxu0 %v2983_v28 }
 0x721   :  { %2986 = vmatpush3.bf16.msra.mxu0 %v2983_v28 }
 0x722   :  { %2988 = vmatprep.subr.bf16.mxu0 %v2987_v31 }
 0x725   :  { %2990 = vmatpush3.bf16.msra.mxu0 %v2987_v31 }
 0x726   :  { %2992 = vmatprep.subr.bf16.mxu0 %v2991_v34 }
 0x729   :  { %2994 = vmatpush3.bf16.msra.mxu0 %v2991_v34 }
 0x72a   :  { %2874 = vmatprep.subr.mxu0 %v3157_v8 }
 0x7ef   :  { %v2822_v45 = vpop.f32.mrb[6].mxu0 }
 0x7f0   :  { %v935_v46 = vadd.f32 %v2822_v45, %v2598_v44  ;;  %v929_v47 = vpop.f32.mrb[7].mxu0 }
 0x7f1   :  { %v930_v48 = vadd.f32 %v2598_v44, %v929_v47 }
 0x7f2   :  { %v939_v49 = vadd.f32 %v935_v46, %v3269_v7 }
 0x7f3   :  { %v938_v50 = vadd.f32 %v930_v48, %v3265_v5  ;;  %v985_v5 = vld [vmem:[%s3658_s8] sm:$0xff] }
 0x7f4   :  { %v945_v51 = vsel %vm78_vm0, %v939_v49, 0.0  ;;  %v2971_v63 = vpack.c.bf16 %v986_v62, %v985_v5 }
 0x7f5   :  { %946 = vadd.xlane.f32.xlu1 %v945_v51  ;;  %v942_v52 = vsel %vm78_vm0, %v938_v50, 0.0 }
 0x7f6   :  { %943 = vadd.xlane.f32.xlu0 %v942_v52  ;;  %2972 = vmatprep.subr.bf16.mxu1 %v2971_v63 }
 0x7f7   :  { %2974 = vmatpush3.bf16.msra.mxu1 %v2971_v63 }
 0x7f8   :  { %2976 = vmatprep.subr.bf16.mxu1 %v2975_v2 }
 0x7fb   :  { %2978 = vmatpush3.bf16.msra.mxu1 %v2975_v2 }
 0x882   :  { %v947_v53 = vpop.xlane.xlu1 %946 }
 0x883   :  { %v950_v54 = vmul.f32 0.03125, %v947_v53  ;;  %v944_v55 = vpop.xlane.xlu0 %943 }
 0x884   :  { %v949_v56 = vmul.f32 0.03125, %v944_v55 }
 0x885   :  { %v952_v57 = vsub.f32 %v939_v49, %v950_v54 }
 0x886   :  { %v951_v58 = vsub.f32 %v938_v50, %v949_v56 }
 0x887   :  { %v954_v61 = vmul.f32 %v952_v57, %v952_v57 }
 0x888   :  { %v953_v59 = vmul.f32 %v951_v58, %v951_v58 }
 0x889   :  { %v958_v7 = vsel %vm78_vm0, %v954_v61, 0.0 }
 0x88a   :  { %v955_v60 = vsel %vm78_vm0, %v953_v59, 0.0  ;;  %v2606_v59 = vld [vmem:[%s3661_s11] ss:$0 sm:$0xff] }
 0x88b   :  { %956 = vadd.xlane.f32.xlu0 %v955_v60 }
 0x88f   :  { %959 = vadd.xlane.f32.xlu0 %v958_v7 }
 0x918   :  { %v957_v3 = vpop.xlane.xlu0 %956 }
 0x919   :  { %v961_v4 = vmul.f32 0.03125, %v957_v3 }
 0x91b   :  { %v963_v6 = vadd.f32 1e-12, %v961_v4 }
 0x91c   :  { %v960_v9 = vpop.xlane.xlu0 %959 }
 0x91d   :  { %3063 = vrsqrt.f32 %v963_v6  ;;  %v962_v10 = vmul.f32 0.03125, %v960_v9 }
 0x91f   :  { %v964_v11 = vadd.f32 1e-12, %v962_v10 }
 0x921   :  { %3065 = vrsqrt.f32 %v964_v11 }
 0x927   :  { %v3064_v12 = vpop.eup %3063 }
 0x928   :  { %v967_v15 = vmul.f32 %v3064_v12, %v951_v58 }
 0x92a   :  { %v975_v17 = vmul.f32 %v2601_v14, %v967_v15 }
 0x92b   :  { %v3066_v18 = vpop.eup %3065 }
 0x92c   :  { %v968_v19 = vmul.f32 %v3066_v18, %v952_v57  ;;  %v983_v20 = vadd.f32 %v2602_v16, %v975_v17  ;;  %v2612_v17 = vld [vmem:[%s3652_s2 + $0x28] sm:$0xff] }
 0x92e   :  { %v976_v21 = vmul.f32 %v2601_v14, %v968_v19  ;;  %2831 = vmatprep.mubr.msk.f32.mxu1 %vm78_vm0, %v983_v20  ;;  %v2613_v19 = vld [vmem:[%s3652_s2 + $0x30] sm:$0xff] }
 0x930   :  { %v984_v22 = vadd.f32 %v2602_v16, %v976_v21  ;;  %v2611_v16 = vld [vmem:[%s3652_s2 + $0x20] sm:$0xff] }
 0x931   :  { %v2995_v18 = vpack.c.bf16 %v2612_v17, %v2611_v16 }
 0x932   :  { %2832 = vmatmul.mubr.msk.f32.vlgmr.msra.gmra.mrb[12].mxu1 %vm78_vm0, %v984_v22 }
 0x933   :  { %2996 = vmatprep.subr.bf16.mxu1 %v2995_v18 }
 0x934   :  { %2998 = vmatpush3.bf16.msra.mxu1 %v2995_v18 }
 0xa05   :  { %v2833_v37 = vpop.f32.mrb[12].mxu1 }
 0xa06   :  { %v1074_v38 = vadd.f32 %v2833_v37, %v2603_v36  ;;  %v1068_v39 = vpop.f32.mrb[13].mxu1 }
 0xa07   :  { %v1069_v40 = vadd.f32 %v2603_v36, %v1068_v39  ;;  %v2616_v39 = vld [vmem:[%s3653_s3 + $0x1] ss:$0 sm:$0xff] }
 0xa08   :  { %v1078_v41 = vmul.f32 %v1074_v38, %v1074_v38 }
 0xa09   :  { %v1077_v42 = vmul.f32 %v1069_v40, %v1069_v40 }
 0xa0a   :  { %v1080_v43 = vmul.f32 %v1078_v41, %v1074_v38 }
 0xa0b   :  { %v1079_v44 = vmul.f32 %v1077_v42, %v1069_v40 }
 0xa0c   :  { %v1082_v45 = vmul.f32 0.044715, %v1080_v43 }
 0xa0d   :  { %v1081_v46 = vmul.f32 0.044715, %v1079_v44 }
 0xa0e   :  { %v1084_v47 = vadd.f32 %v1082_v45, %v1074_v38 }
 0xa0f   :  { %v1083_v48 = vadd.f32 %v1081_v46, %v1069_v40 }
 0xa10   :  { %v1086_v49 = vmul.f32 0.7978846, %v1084_v47 }
 0xa11   :  { %v1085_v50 = vmul.f32 0.7978846, %v1083_v48 }
 0xa12   :  { %3067 = vtanh.f32 %v1086_v49 }
 0xa13   :  { %3069 = vtanh.f32 %v1085_v50 }
 0xa1c   :  { %v3068_v51 = vpop.eup %3067 }
 0xa1d   :  { %v3070_v52 = vpop.eup %3069  ;;  %v1090_v53 = vadd.f32 1.0, %v3068_v51 }
 0xa1e   :  { %v1089_v54 = vadd.f32 1.0, %v3070_v52 }
 0xa1f   :  { %v1092_v55 = vmul.f32 0.5, %v1090_v53 }
 0xa20   :  { %v1091_v56 = vmul.f32 0.5, %v1089_v54 }
 0xa21   :  { %v1094_v58 = vmul.f32 %v1092_v55, %v1074_v38 }
 0xa22   :  { %v1093_v57 = vmul.f32 %v1091_v56, %v1069_v40 }
 0xa24   :  { %2850 = vmatprep.mubr.msk.f32.mxu0 %vm1110_vm4, %v1093_v57 }
 0xa25   :  { %2851 = vmatmul.mubr.msk.f32.vlgmr.msra.gmra.mrb[8].mxu0 %vm1110_vm4, %v1094_v58 }
 0xa26   :  { %2876 = vmatprep.mubr.msk.f32.mxu0 %vm3158_vm1, %v3157_v8 }
 0xaf8   :  { %v2852_v60 = vpop.f32.mrb[8].mxu0 }
 0xaf9   :  { %v1189_v61 = vadd.f32 %v2852_v60, %v2606_v59  ;;  %v1183_v7 = vpop.f32.mrb[9].mxu0 }
 0xafa   :  { %v1184_v5 = vadd.f32 %v2606_v59, %v1183_v7 }
 0xafb   :  { %v1193_v62 = vadd.f32 %v1189_v61, %v984_v22 }
 0xafc   :  { %v1192_v63 = vadd.f32 %v1184_v5, %v983_v20  ;;  %v2614_v20 = vld [vmem:[%s3652_s2 + $0x38] sm:$0xff] }
 0xafd   :  { %v1199_v0 = vsel %vm78_vm0, %v1193_v62, 0.0  ;;  %v2999_v21 = vpack.c.bf16 %v2614_v20, %v2613_v19 }
 0xafe   :  { %1200 = vadd.xlane.f32.xlu0 %v1199_v0  ;;  %v1196_v1 = vsel %vm78_vm0, %v1192_v63, 0.0 }
 0xaff   :  { %1197 = vadd.xlane.f32.xlu1 %v1196_v1  ;;  %3000 = vmatprep.subr.bf16.mxu1 %v2999_v21 }
 0xb00   :  { %3002 = vmatpush3.bf16.msra.mxu1 %v2999_v21 }
 0xb01   :  { %2864 = vmatprep.subr.mxu1 %v3157_v8 }
 0xb8b   :  { %v1201_v2 = vpop.xlane.xlu0 %1200 }
 0xb8c   :  { %v1203_v3 = vmul.f32 0.03125, %v1201_v2  ;;  %v1198_v4 = vpop.xlane.xlu1 %1197 }
 0xb8d   :  { %v1202_v6 = vmul.f32 0.03125, %v1198_v4 }
 0xb8e   :  { %v1205_v9 = vsub.f32 %v1193_v62, %v1203_v3 }
 0xb8f   :  { %v1204_v10 = vsub.f32 %v1192_v63, %v1202_v6 }
 0xb90   :  { %v1207_v11 = vmul.f32 %v1205_v9, %v1205_v9 }
 0xb91   :  { %v1206_v12 = vmul.f32 %v1204_v10, %v1204_v10 }
 0xb92   :  { %v1211_v14 = vsel %vm78_vm0, %v1207_v11, 0.0 }
 0xb93   :  { %1212 = vadd.xlane.f32.xlu0 %v1211_v14  ;;  %v1208_v15 = vsel %vm78_vm0, %v1206_v12, 0.0 }
 0xb94   :  { %1209 = vadd.xlane.f32.xlu1 %v1208_v15 }
 0xc20   :  { %v1213_v22 = vpop.xlane.xlu0 %1212 }
 0xc21   :  { %v1215_v23 = vmul.f32 0.03125, %v1213_v22  ;;  %v1210_v13 = vpop.xlane.xlu1 %1209 }
 0xc22   :  { %v1214_v24 = vmul.f32 0.03125, %v1210_v13 }
 0xc23   :  { %v1217_v26 = vadd.f32 1e-12, %v1215_v23 }
 0xc24   :  { %v1216_v27 = vadd.f32 1e-12, %v1214_v24 }
 0xc25   :  { %3071 = vrsqrt.f32 %v1217_v26 }
 0xc26   :  { %3073 = vrsqrt.f32 %v1216_v27 }
 0xc2f   :  { %v3072_v28 = vpop.eup %3071 }
 0xc30   :  { %v3074_v30 = vpop.eup %3073  ;;  %v1221_v31 = vmul.f32 %v3072_v28, %v1205_v9 }
 0xc31   :  { %v1220_v32 = vmul.f32 %v3074_v30, %v1204_v10 }
 0xc32   :  { %v1229_v34 = vmul.f32 %v2609_v29, %v1221_v31 }
 0xc33   :  { %v1228_v36 = vmul.f32 %v2609_v29, %v1220_v32 }
 0xc34   :  { %v3459_v38 = vadd.f32 %v2610_v33, %v1229_v34 }
 0xc35   :  { %v3457_v37 = vadd.f32 %v2610_v33, %v1228_v36 }
 0xc37   :  { %2861 = vmatprep.mubr.msk.f32.mxu1 %vm78_vm0, %v3457_v37 }
 0xc38   :  { %2862 = vmatmul.mubr.msk.f32.vlgmr.msra.gmra.mrb[14].mxu1 %vm78_vm0, %v3459_v38 }
 0xc39   :  { %2866 = vmatprep.mubr.msk.f32.mxu1 %vm3158_vm1, %v3157_v8 }
 0xd0b   :  { %v2863_v40 = vpop.f32.mrb[14].mxu1 }
 0xd0c   :  { %v1323_v41 = vpop.f32.mrb[15].mxu1  ;;  %v3476_v43 = vadd.f32 %v2863_v40, %v2616_v39 }
 0xd0d   :  { %v3470_v42 = vadd.f32 %v2616_v39, %v1323_v41 }
 0xd0f   :  { %1500 = vrot.lane.b32.xlu0 %v3470_v42, %s3161_s22  ;;  %1333 = vrot.lane.b32.xlu1 %v3470_v42, %s3160_s21 }
 0xd13   :  { %1838 = vrot.lane.b32.xlu0 %v3476_v43, %s3161_s22  ;;  %1498 = vrot.lane.b32.xlu1 %v3470_v42, %s3162_s23 }
 0xd17   :  { %1671 = vrot.lane.b32.xlu1 %v3476_v43, %s3160_s21 }
 0xd1b   :  { %1836 = vrot.lane.b32.xlu1 %v3476_v43, %s3162_s23 }
 0xd81   :  { %v1501_v44 = vpop.permute.xlu0 %1500  ;;  %v1334_v45 = vpop.permute.xlu1 %1333 }
 0xd82   :  { %2865 = vmatpush3.xpose.msk.msra.mxu1 %vm163_vm2, %v1334_v45  ;;  %2875 = vmatpush3.xpose.msk.msra.mxu0 %vm163_vm2, %v1501_v44  ;;  %v2631_v45 = vld [vmem:[%s3654_s4 + $0x20] sm:$0xff] }
 0xd83   :  { %2884 = vmatprep.subr.mxu0 %v3157_v8  ;;  %2869 = vmatprep.subr.mxu1 %v3157_v8 }
 0xd85   :  { %2867 = vmatmul.mubr.msk.f32.vlgmr.msra.gmra.mrb[16].mxu1 %vm163_vm2, %v3470_v42  ;;  %v1499_v46 = vpop.permute.xlu1 %1498  ;;  %v1839_v48 = vpop.permute.xlu0 %1838 }
 0xd86   :  { %2877 = vmatmul.mubr.msk.f32.vlgmr.msra.gmra.mrb[10].mxu0 %vm163_vm2, %v1499_v46  ;;  %2871 = vmatprep.mubr.msk.f32.mxu1 %vm3158_vm1, %v3157_v8  ;;  %v2632_v46 = vld [vmem:[%s3654_s4 + $0x28] sm:$0xff] }
 0xd87   :  { %2886 = vmatprep.mubr.msk.f32.mxu0 %vm3158_vm1, %v3157_v8 }
 0xd89   :  { %v1672_v47 = vpop.permute.xlu1 %1671 }
 0xd8a   :  { %2885 = vmatpush3.xpose.msk.msra.mxu0 %vm163_vm2, %v1672_v47  ;;  %v3003_v47 = vpack.c.bf16 %v2632_v46, %v2631_v45  ;;  %v2654_v45 = vld [vmem:[%s3660_s10 + $0x58] sm:$0xff] }
 0xd8b   :  { %2894 = vmatprep.subr.mxu0 %v3157_v8 }
 0xd8d   :  { %2887 = vmatmul.mubr.msk.f32.vlgmr.msra.gmra.mrb[12].mxu0 %vm163_vm2, %v3476_v43  ;;  %v1837_v49 = vpop.permute.xlu1 %1836 }
 0xd8e   :  { %2895 = vmatpush3.xpose.msk.msra.mxu0 %vm163_vm2, %v1839_v48  ;;  %2896 = vmatprep.mubr.msk.f32.mxu0 %vm3158_vm1, %v3157_v8  ;;  %v2633_v48 = vld [vmem:[%s3654_s4 + $0x30] sm:$0xff] }
 0xd8f   :  { %3004 = vmatprep.subr.bf16.mxu0 %v3003_v47 }
 0xd91   :  { %2897 = vmatmul.mubr.msk.f32.vlgmr.msra.gmra.mrb[14].mxu0 %vm163_vm2, %v1837_v49  ;;  %v2634_v49 = vld [vmem:[%s3654_s4 + $0x38] sm:$0xff] }
 0xd92   :  { %3006 = vmatpush3.bf16.msra.mxu0 %v3003_v47  ;;  %v2655_v47 = vld [vmem:[%s3660_s10 + $0x60] sm:$0xff] }
 0xe58   :  { %v1405_v50 = vpop.f32.mrb[16].mxu1 }
 0xe59   :  { %v1409_v51 = vmul.f32 0.25, %v1405_v50  ;;  %v2868_v52 = vpop.f32.mrb[17].mxu1  ;;  %v1572_v53 = vpop.f32.mrb[10].mxu0  ;;  %v3007_v50 = vpack.c.bf16 %v2634_v49, %v2633_v48  ;;  %v2656_v48 = vld [vmem:[%s3660_s10 + $0x68] sm:$0xff] }
 0xe5a   :  { %v1576_v54 = vmul.f32 0.25, %v1572_v53  ;;  %v2878_v55 = vpop.f32.mrb[11].mxu0  ;;  %v3027_v49 = vpack.c.bf16 %v2656_v48, %v2655_v47 }
 0xe5b   :  { %v1410_v56 = vadd.f32 %v1409_v51, %v3305_v25  ;;  %3008 = vmatprep.subr.bf16.mxu0 %v3007_v50 }
 0xe5c   :  { %v1577_v57 = vadd.f32 %v1576_v54, %v3305_v25  ;;  %3010 = vmatpush3.bf16.msra.mxu0 %v3007_v50  ;;  %v2657_v50 = vld [vmem:[%s3660_s10 + $0x70] sm:$0xff] }
 0xe5d   :  { %v1411_v58 = vsel %vm244_vm3, %v1410_v56, -inf }
 0xe5e   :  { %1412 = vmax.xlane.f32.xlu0 %v1411_v58  ;;  %v1578_v59 = vsel %vm244_vm3, %v1577_v57, -inf }
 0xe5f   :  { %1579 = vmax.xlane.f32.xlu1 %v1578_v59 }
 0xe60   :  { %v1743_v60 = vpop.f32.mrb[12].mxu0 }
 0xe61   :  { %v1747_v61 = vmul.f32 0.25, %v1743_v60  ;;  %v2888_v7 = vpop.f32.mrb[13].mxu0 }
 0xe63   :  { %v1748_v5 = vadd.f32 %v1747_v61, %v3311_v35 }
 0xe64   :  { %v1910_v62 = vpop.f32.mrb[14].mxu0 }
 0xe65   :  { %v1914_v63 = vmul.f32 0.25, %v1910_v62  ;;  %v2898_v0 = vpop.f32.mrb[15].mxu0  ;;  %v1749_v1 = vsel %vm244_vm3, %v1748_v5, -inf }
 0xe66   :  { %1750 = vmax.xlane.f32.xlu0 %v1749_v1 }
 0xe67   :  { %v1915_v2 = vadd.f32 %v1914_v63, %v3311_v35 }
 0xe69   :  { %v1916_v25 = vsel %vm244_vm3, %v1915_v2, -inf }
 0xe6a   :  { %1917 = vmax.xlane.f32.xlu0 %v1916_v25 }
 0xe70   :  { %1422 = vrot.lane.b32.xlu1 %v3470_v42, %s3159_s20 }
 0xeeb   :  { %v1413_v3 = vpop.xlane.xlu0 %1412 }
 0xeec   :  { %v1414_v4 = vsub.f32 %v1410_v56, %v1413_v3  ;;  %v1580_v6 = vpop.xlane.xlu1 %1579 }
 0xeed   :  { %v1581_v9 = vsub.f32 %v1577_v57, %v1580_v6 }
 0xeee   :  { %v1415_v10 = vmul.f32 1.442695, %v1414_v4 }
 0xeef   :  { %v1582_v11 = vmul.f32 1.442695, %v1581_v9 }
 0xef0   :  { %3075 = vpow2.f32 %v1415_v10  ;;  %v1423_v12 = vpop.permute.xlu1 %1422 }
 0xef1   :  { %3077 = vpow2.f32 %v1582_v11  ;;  %2870 = vmatpush3.msra.mxu1 %v1423_v12 }
 0xef2   :  { %2879 = vmatprep.subr.mxu1 %v3157_v8 }
 0xef3   :  { %v1751_v14 = vpop.xlane.xlu0 %1750 }
 0xef4   :  { %v1752_v35 = vsub.f32 %v1748_v5, %v1751_v14  ;;  %v2636_v5 = vld [vmem:[%s3655_s5 + $0x1] ss:$0 sm:$0xff] }
 0xef6   :  { %v1753_v15 = vmul.f32 1.442695, %v1752_v35 }
 0xef7   :  { %v1918_v16 = vpop.xlane.xlu0 %1917 }
 0xef8   :  { %3079 = vpow2.f32 %v1753_v15  ;;  %v1919_v17 = vsub.f32 %v1915_v2, %v1918_v16 }
 0xefa   :  { %v3076_v18 = vpop.eup %3075  ;;  %v1920_v19 = vmul.f32 1.442695, %v1919_v17  ;;  %v2644_v17 = vld [vmem:[%s3658_s8 + $0x28] sm:$0xff] }
 0xefb   :  { %v3078_v20 = vpop.eup %3077  ;;  %v1417_v21 = vsel %vm244_vm3, %v3076_v18, 0.0 }
 0xefc   :  { %3081 = vpow2.f32 %v1920_v19  ;;  %1418 = vadd.xlane.f32.xlu1 %v1417_v21  ;;  %v1584_v22 = vsel %vm244_vm3, %v3078_v20, 0.0  ;;  %v2645_v19 = vld [vmem:[%s3658_s8 + $0x30] sm:$0xff] }
 0xefd   :  { %1585 = vadd.xlane.f32.xlu0 %v1584_v22 }
 0xf02   :  { %v3080_v23 = vpop.eup %3079 }
 0xf03   :  { %v1755_v13 = vsel %vm244_vm3, %v3080_v23, 0.0 }
 0xf04   :  { %1756 = vadd.xlane.f32.xlu1 %v1755_v13 }
 0xf06   :  { %v3082_v24 = vpop.eup %3081 }
 0xf07   :  { %v1922_v26 = vsel %vm244_vm3, %v3082_v24, 0.0 }
 0xf08   :  { %1923 = vadd.xlane.f32.xlu0 %v1922_v26 }
 0xf15   :  { %1760 = vrot.lane.b32.xlu1 %v3476_v43, %s3159_s20 }
 0xf19   :  { %1927 = vrot.lane.b32.xlu1 %v3476_v43, %s3163_s26 }
 0xf1e   :  { %1589 = vrot.lane.b32.xlu0 %v3470_v42, %s3163_s26 }
 0xf89   :  { %v1419_v27 = vpop.xlane.xlu1 %1418 }
 0xf8a   :  { %3083 = vrcp.f32 %v1419_v27  ;;  %v1586_v28 = vpop.xlane.xlu0 %1585 }
 0xf8b   :  { %3085 = vrcp.f32 %v1586_v28 }
 0xf91   :  { %v1757_v29 = vpop.xlane.xlu1 %1756 }
 0xf92   :  { %3087 = vrcp.f32 %v1757_v29  ;;  %v2641_v29 = vld [vmem:[%s3656_s6 + $0x1] ss:$0 sm:$0xff] }
 0xf94   :  { %v3084_v30 = vpop.eup %3083 }
 0xf95   :  { %v1421_v31 = vmul.f32 %v3084_v30, %v3076_v18  ;;  %v1924_v32 = vpop.xlane.xlu0 %1923  ;;  %v3086_v33 = vpop.eup %3085 }
 0xf96   :  { %3089 = vrcp.f32 %v1924_v32  ;;  %v1588_v34 = vmul.f32 %v3086_v33, %v3078_v20  ;;  %v1761_v36 = vpop.permute.xlu1 %1760  ;;  %v2646_v20 = vld [vmem:[%s3658_s8 + $0x38] sm:$0xff] }
 0xf97   :  { %2872 = vmatmul.mubr.msk.f32.vlgmr.msra.gmra.mrb[18].mxu1 %vm244_vm3, %v1421_v31  ;;  %v3015_v21 = vpack.c.bf16 %v2646_v20, %v2645_v19  ;;  %v2642_v31 = vld [vmem:[%s3657_s7 + $0x1] ss:$0 sm:$0xff] }
 0xf98   :  { %2881 = vmatprep.mubr.msk.f32.mxu1 %vm3158_vm1, %v3157_v8 }
 0xf99   :  { %v1590_v39 = vpop.permute.xlu0 %1589 }
 0xf9a   :  { %2880 = vmatpush3.msra.mxu1 %v1590_v39  ;;  %v1928_v42 = vpop.permute.xlu1 %1927 }
 0xf9b   :  { %2882 = vmatmul.mubr.msk.f32.vlgmr.msra.gmra.mrb[20].mxu1 %vm244_vm3, %v1588_v34  ;;  %2889 = vmatprep.subr.mxu1 %v3157_v8 }
 0xf9c   :  { %v3088_v40 = vpop.eup %3087  ;;  %2890 = vmatpush3.msra.mxu1 %v1761_v36  ;;  %2891 = vmatprep.mubr.msk.f32.mxu1 %vm3158_vm1, %v3157_v8 }
 0xf9d   :  { %v1759_v41 = vmul.f32 %v3088_v40, %v3080_v23  ;;  %2899 = vmatprep.subr.mxu1 %v3157_v8 }
 0xf9f   :  { %2892 = vmatmul.mubr.msk.f32.vlgmr.msra.gmra.mrb[22].mxu1 %vm244_vm3, %v1759_v41  ;;  %v2651_v41 = vld [vmem:[%s3660_s10 + $0x40] sm:$0xff] }
 0xfa0   :  { %v3090_v43 = vpop.eup %3089  ;;  %2900 = vmatpush3.msra.mxu1 %v1928_v42  ;;  %2901 = vmatprep.mubr.msk.f32.mxu1 %vm3158_vm1, %v3157_v8  ;;  %v2652_v42 = vld [vmem:[%s3660_s10 + $0x48] sm:$0xff] }
 0xfa1   :  { %v1926_v44 = vmul.f32 %v3090_v43, %v3082_v24  ;;  %v3019_v43 = vpack.c.bf16 %v2652_v42, %v2651_v41  ;;  %v2665_v42 = vld [vmem:[%s3662_s12 + $0x1] ss:$0 sm:$0xff]  ;;  %s3165_s12 = smov [#allocation5]  }
 0xfa3   :  { %2902 = vmatmul.mubr.msk.f32.vlgmr.msra.gmra.mrb[24].mxu1 %vm244_vm3, %v1926_v44  ;;  %3020 = vmatprep.subr.bf16.mxu0 %v3019_v43  ;;  %v2653_v44 = vld [vmem:[%s3660_s10 + $0x50] sm:$0xff] }
 0xfa4   :  { %v3023_v46 = vpack.c.bf16 %v2654_v45, %v2653_v44  ;;  %v2666_v45 = vld [vmem:[%s3663_s13 + $0x1] ss:$0 sm:$0xff]  ;;  %s2574_s13 = sshll.u32 %s3165_s12, 4  ;;  %s2575_s13 = int_to_ptr.vmem [resolvable:$true] %s2574_s13 }
 0xfa5   :  { %p3133_p9 = scmp.lt.s32.totalorder %s2575_s13, %s2575_s13 }
0x106a   :  { %v1494_v51 = vpop.f32.mrb[18].mxu1 }
0x106b   :  { %v2873_v52 = vpop.f32.mrb[19].mxu1 }
0x106e   :  { %v1661_v53 = vpop.f32.mrb[20].mxu1 }
0x106f   :  { %1666 = vrot.lane.b32.xlu0 %v1661_v53, %s3164_s0  ;;  %v2883_v54 = vpop.f32.mrb[21].mxu1  ;;  %v2648_v53 = vld [vmem:[%s3659_s9 + $0x1] ss:$0 sm:$0xff] }
0x1072   :  { %v1832_v55 = vpop.f32.mrb[22].mxu1 }
0x1073   :  { %v2893_v56 = vpop.f32.mrb[23].mxu1 }
0x1076   :  { %v1999_v57 = vpop.f32.mrb[24].mxu1 }
0x1077   :  { %2004 = vrot.lane.b32.xlu1 %v1999_v57, %s3164_s0  ;;  %v2903_v58 = vpop.f32.mrb[25].mxu1 }
0x10e1   :  { %v1667_v59 = vpop.permute.xlu0 %1666 }
0x10e2   :  { %v1669_v60 = vsel %vm163_vm2, %v1494_v51, %v1667_v59  ;;  %v2658_v51 = vld [vmem:[%s3660_s10 + $0x78] sm:$0xff] }
0x10e3   :  { %2912 = vmatprep.mubr.msk.f32.mxu0 %vm78_vm0, %v1669_v60  ;;  %v3031_v52 = vpack.c.bf16 %v2658_v51, %v2657_v50 }
0x10e9   :  { %v2005_v61 = vpop.permute.xlu1 %2004 }
0x10ea   :  { %v2007_v7 = vsel %vm163_vm2, %v1832_v55, %v2005_v61 }
0x10eb   :  { %2913 = vmatmul.mubr.msk.f32.vlgmr.msra.gmra.mrb[16].mxu0 %vm78_vm0, %v2007_v7 }
0x10ec   :  { %3022 = vmatpush3.bf16.msra.mxu0 %v3019_v43 }
0x10ed   :  { %3024 = vmatprep.subr.bf16.mxu0 %v3023_v46 }
0x10f0   :  { %3026 = vmatpush3.bf16.msra.mxu0 %v3023_v46 }
0x10f1   :  { %3028 = vmatprep.subr.bf16.mxu0 %v3027_v49 }
0x10f4   :  { %3030 = vmatpush3.bf16.msra.mxu0 %v3027_v49 }
0x10f5   :  { %3032 = vmatprep.subr.bf16.mxu0 %v3031_v52 }
0x10f8   :  { %3034 = vmatpush3.bf16.msra.mxu0 %v3031_v52 }
0x11be   :  { %v2914_v62 = vpop.f32.mrb[16].mxu0 }
0x11bf   :  { %v2099_v63 = vadd.f32 %v2914_v62, %v2636_v5  ;;  %v2093_v0 = vpop.f32.mrb[17].mxu0 }
0x11c0   :  { %v2094_v1 = vadd.f32 %v2636_v5, %v2093_v0 }
0x11c1   :  { %v2103_v2 = vadd.f32 %v2099_v63, %v3459_v38 }
0x11c2   :  { %v2102_v25 = vadd.f32 %v2094_v1, %v3457_v37  ;;  %v2643_v37 = vld [vmem:[%s3658_s8 + $0x20] sm:$0xff]  ;;  %s3128_s8 = scalar_lea.vmem %s2575_s13, 32 }
0x11c3   :  { %v2111_v3 = vsel %vm78_vm0, %v2103_v2, 0.0  ;;  %v3011_v18 = vpack.c.bf16 %v2644_v17, %v2643_v37  ;;  %p3129_p8 = scmp.ne.s32.totalorder %s2575_s13, %s3128_s8  ;;  %p3134_p10 = scmp.lt.s32.totalorder %s3128_s8, %s3128_s8 }
0x11c4   :  { %2112 = vadd.xlane.f32.xlu1 %v2111_v3  ;;  %v2108_v4 = vsel %vm78_vm0, %v2102_v25, 0.0 }
0x11c5   :  { %2109 = vadd.xlane.f32.xlu0 %v2108_v4  ;;  %3012 = vmatprep.subr.bf16.mxu1 %v3011_v18  ;;  %p3135_p11 = por %p3134_p10, %p3133_p9 }
0x11c6   :  { %3014 = vmatpush3.bf16.msra.mxu1 %v3011_v18 }
0x11c7   :  { %3016 = vmatprep.subr.bf16.mxu1 %v3015_v21  ;;  %p3136_p12 = pnand %p3135_p11, %p3129_p8 }
0x11ca   :  { %3018 = vmatpush3.bf16.msra.mxu1 %v3015_v21 }
0x11cb   :  { %2945 = vmatprep.subr.mxu1 %v3157_v8 }
0x1251   :  { %v2113_v6 = vpop.xlane.xlu1 %2112 }
0x1252   :  { %v2115_v9 = vmul.f32 0.03125, %v2113_v6  ;;  %v2110_v10 = vpop.xlane.xlu0 %2109 }
0x1253   :  { %v2114_v11 = vmul.f32 0.03125, %v2110_v10 }
0x1254   :  { %v2117_v12 = vsub.f32 %v2103_v2, %v2115_v9 }
0x1255   :  { %v2116_v14 = vsub.f32 %v2102_v25, %v2114_v11 }
0x1256   :  { %v2119_v16 = vmul.f32 %v2117_v12, %v2117_v12 }
0x1257   :  { %v2118_v35 = vmul.f32 %v2116_v14, %v2116_v14 }
0x1258   :  { %v2123_v38 = vsel %vm78_vm0, %v2119_v16, 0.0 }
0x1259   :  { %v2120_v15 = vsel %vm78_vm0, %v2118_v35, 0.0 }
0x125a   :  { %2121 = vadd.xlane.f32.xlu0 %v2120_v15 }
0x125e   :  { %2124 = vadd.xlane.f32.xlu0 %v2123_v38 }
0x12e7   :  { %v2122_v22 = vpop.xlane.xlu0 %2121 }
0x12e8   :  { %v2126_v23 = vmul.f32 0.03125, %v2122_v22 }
0x12ea   :  { %v2128_v13 = vadd.f32 1e-12, %v2126_v23 }
0x12eb   :  { %v2125_v24 = vpop.xlane.xlu0 %2124 }
0x12ec   :  { %3091 = vrsqrt.f32 %v2128_v13  ;;  %v2127_v26 = vmul.f32 0.03125, %v2125_v24 }
0x12ee   :  { %v2129_v27 = vadd.f32 1e-12, %v2127_v26 }
0x12f0   :  { %3093 = vrsqrt.f32 %v2129_v27 }
0x12f6   :  { %v3092_v28 = vpop.eup %3091 }
0x12f7   :  { %v2132_v30 = vmul.f32 %v3092_v28, %v2116_v14 }
0x12f9   :  { %v2140_v32 = vmul.f32 %v2641_v29, %v2132_v30 }
0x12fa   :  { %v3094_v33 = vpop.eup %3093 }
0x12fb   :  { %v2133_v34 = vmul.f32 %v3094_v33, %v2117_v12  ;;  %v2148_v36 = vadd.f32 %v2642_v31, %v2140_v32  ;;  %v2660_v12 = vld [vmem:[%s3661_s11 + $0x1] ss:$0 sm:$0xff] }
0x12fd   :  { %v2141_v39 = vmul.f32 %v2641_v29, %v2133_v34  ;;  %2923 = vmatprep.mubr.msk.f32.mxu1 %vm78_vm0, %v2148_v36  ;;  %v3105_v29 = vld [vmem:[%s3651_s1] sm:$0x3] }
0x12fe   :  { %v2560_v30 = vsel %vm2559_vm5, %v3105_v29, 0.0  ;;  %v2481_v50 = vrot.slane %v3105_v29, 1 }
0x12ff   :  { %v2149_v40 = vadd.f32 %v2642_v31, %v2141_v39 }
0x1301   :  { %2924 = vmatmul.mubr.msk.f32.vlgmr.msra.gmra.mrb[26].mxu1 %vm78_vm0, %v2149_v40 }
0x1302   :  { %2947 = vmatprep.mubr.msk.f32.mxu1 %vm3158_vm1, %v3157_v8 }
0x13d4   :  { %v2925_v54 = vpop.f32.mrb[26].mxu1 }
0x13d5   :  { %v2241_v55 = vadd.f32 %v2925_v54, %v2648_v53  ;;  %v2235_v56 = vpop.f32.mrb[27].mxu1 }
0x13d6   :  { %v2236_v57 = vadd.f32 %v2648_v53, %v2235_v56 }
0x13d7   :  { %v2245_v58 = vmul.f32 %v2241_v55, %v2241_v55 }
0x13d8   :  { %v2244_v59 = vmul.f32 %v2236_v57, %v2236_v57 }
0x13d9   :  { %v2247_v60 = vmul.f32 %v2245_v58, %v2241_v55 }
0x13da   :  { %v2246_v61 = vmul.f32 %v2244_v59, %v2236_v57 }
0x13db   :  { %v2249_v7 = vmul.f32 0.044715, %v2247_v60 }
0x13dc   :  { %v2248_v5 = vmul.f32 0.044715, %v2246_v61 }
0x13dd   :  { %v2251_v62 = vadd.f32 %v2249_v7, %v2241_v55 }
0x13de   :  { %v2250_v63 = vadd.f32 %v2248_v5, %v2236_v57 }
0x13df   :  { %v2253_v0 = vmul.f32 0.7978846, %v2251_v62 }
0x13e0   :  { %v2252_v1 = vmul.f32 0.7978846, %v2250_v63 }
0x13e1   :  { %3095 = vtanh.f32 %v2253_v0 }
0x13e2   :  { %3097 = vtanh.f32 %v2252_v1 }
0x13eb   :  { %v3096_v2 = vpop.eup %3095 }
0x13ec   :  { %v3098_v25 = vpop.eup %3097  ;;  %v2257_v3 = vadd.f32 1.0, %v3096_v2 }
0x13ed   :  { %v2256_v4 = vadd.f32 1.0, %v3098_v25 }
0x13ee   :  { %v2259_v6 = vmul.f32 0.5, %v2257_v3 }
0x13ef   :  { %v2258_v9 = vmul.f32 0.5, %v2256_v4 }
0x13f0   :  { %v2261_v11 = vmul.f32 %v2259_v6, %v2241_v55 }
0x13f1   :  { %v2260_v10 = vmul.f32 %v2258_v9, %v2236_v57 }
0x13f3   :  { %2942 = vmatprep.mubr.msk.f32.mxu0 %vm1110_vm4, %v2260_v10 }
0x13f4   :  { %2943 = vmatmul.mubr.msk.f32.vlgmr.msra.gmra.mrb[18].mxu0 %vm1110_vm4, %v2261_v11 }
0x14c7   :  { %v2944_v14 = vpop.f32.mrb[18].mxu0 }
0x14c8   :  { %v2357_v35 = vadd.f32 %v2944_v14, %v2660_v12  ;;  %v2351_v15 = vpop.f32.mrb[19].mxu0 }
0x14c9   :  { %v2352_v16 = vadd.f32 %v2660_v12, %v2351_v15 }
0x14ca   :  { %v2361_v38 = vadd.f32 %v2357_v35, %v2149_v40 }
0x14cb   :  { %v2360_v37 = vadd.f32 %v2352_v16, %v2148_v36 }
0x14cc   :  { %v2369_v17 = vsel %vm78_vm0, %v2361_v38, 0.0 }
0x14cd   :  { %2370 = vadd.xlane.f32.xlu0 %v2369_v17  ;;  %v2366_v18 = vsel %vm78_vm0, %v2360_v37, 0.0 }
0x14ce   :  { %2367 = vadd.xlane.f32.xlu1 %v2366_v18 }
0x155a   :  { %v2371_v19 = vpop.xlane.xlu0 %2370 }
0x155b   :  { %v2373_v20 = vmul.f32 0.03125, %v2371_v19  ;;  %v2368_v21 = vpop.xlane.xlu1 %2367 }
0x155c   :  { %v2372_v22 = vmul.f32 0.03125, %v2368_v21 }
0x155d   :  { %v2375_v23 = vsub.f32 %v2361_v38, %v2373_v20 }
0x155e   :  { %v2374_v13 = vsub.f32 %v2360_v37, %v2372_v22 }
0x155f   :  { %v2377_v24 = vmul.f32 %v2375_v23, %v2375_v23 }
0x1560   :  { %v2376_v26 = vmul.f32 %v2374_v13, %v2374_v13 }
0x1561   :  { %v2381_v27 = vsel %vm78_vm0, %v2377_v24, 0.0 }
0x1562   :  { %2382 = vadd.xlane.f32.xlu0 %v2381_v27  ;;  %v2378_v28 = vsel %vm78_vm0, %v2376_v26, 0.0 }
0x1563   :  { %2379 = vadd.xlane.f32.xlu1 %v2378_v28 }
0x1567   :  { %2561 = vadd.xlane.f32.xlu1 %v2560_v30 }
0x15ef   :  { %v2383_v31 = vpop.xlane.xlu0 %2382 }
0x15f0   :  { %v2385_v32 = vmul.f32 0.03125, %v2383_v31  ;;  %v2380_v33 = vpop.xlane.xlu1 %2379 }
0x15f1   :  { %v2384_v34 = vmul.f32 0.03125, %v2380_v33 }
0x15f2   :  { %v2387_v36 = vadd.f32 1e-12, %v2385_v32 }
0x15f3   :  { %v2386_v39 = vadd.f32 1e-12, %v2384_v34 }
0x15f4   :  { %3099 = vrsqrt.f32 %v2387_v36  ;;  %v2562_v51 = vpop.xlane.xlu1 %2561 }
0x15f5   :  { %3101 = vrsqrt.f32 %v2386_v39  ;;  %v2563_v52 = vmax.f32 %v2562_v51, 1e-09 }
0x15f7   :  { %3103 = vrcp.f32 %v2563_v52 }
0x15fe   :  { %v3100_v40 = vpop.eup %3099 }
0x15ff   :  { %v3102_v41 = vpop.eup %3101  ;;  %v2391_v43 = vmul.f32 %v3100_v40, %v2375_v23 }
0x1600   :  { %v2390_v44 = vmul.f32 %v3102_v41, %v2374_v13 }
0x1601   :  { %v2399_v47 = vmul.f32 %v2665_v42, %v2391_v43  ;;  %v3104_v56 = vpop.eup %3103 }
0x1602   :  { %v2398_v46 = vmul.f32 %v2665_v42, %v2390_v44 }
0x1603   :  { %v2407_v49 = vadd.f32 %v2666_v45, %v2399_v47 }
0x1604   :  { %v2406_v48 = vadd.f32 %v2666_v45, %v2398_v46 }
0x1606   :  { %2946 = vmatpush3.msra.mxu1 %v2406_v48 }
0x1607   :  { %2948 = vmatmul.mubr.msk.f32.vlgmr.msra.gmra.mrb[28].mxu1 %vm244_vm3, %v3105_v29  ;;  %2950 = vmatprep.subr.mxu1 %v3157_v8 }
0x1608   :  { %2951 = vmatpush3.msra.mxu1 %v2407_v49  ;;  %2952 = vmatprep.mubr.msk.f32.mxu1 %vm3158_vm1, %v3157_v8 }
0x160b   :  { %2953 = vmatmul.mubr.msk.f32.vlgmr.msra.gmra.mrb[30].mxu1 %vm244_vm3, %v2481_v50 }
0x16da   :  { %v2477_v53 = vpop.f32.mrb[28].mxu1 }
0x16db   :  { %v2949_v54 = vpop.f32.mrb[29].mxu1 }
0x16de   :  { %v2550_v55 = vpop.f32.mrb[30].mxu1 }
0x16df   :  { %v2555_v57 = vrot.slane %v2550_v55, 7  ;;  %v2954_v58 = vpop.f32.mrb[31].mxu1 }
0x16e1   :  { %v2558_v59 = vsel %vm2557_vm6, %v2477_v53, %v2555_v57 }
0x16e2   :  { %v2565_v60 = vmul.f32 %v3104_v56, %v2558_v59 }
0x16e4   :  { %2567 = vst.msk [vmem:[#allocation5] sm:$0x3] %vm2566_vm7, %v2565_v60 }
0x16e5   :  { %3139 = shalt.err (!%p3136_p12)
}
0x16e6   :  { %s3140_s6 = scalar_lea.hbm %s3664_s14, 32 }
0x16e7   :  { %p3141_p13 = scmp.ne.s32.totalorder %s3664_s14, %s3140_s6  ;;  %p3144_p0 = scmp.lt.u32.totalorder %s3140_s6, %s3664_s14 }
0x16e9   :  { %p3146_p1 = pnand %p3144_p0, %p3141_p13 }
0x16eb   :  { %3149 = shalt.err (!%p3146_p1)
}
0x16ec   :  { %2577 = dma.vmem_to_hbm [thread:$0]  %s2575_s13, 32, %s3664_s14, [#allocation4]  }
0x16ed   :  { %3152 = dma.done.wait [#allocation4], 32  }
0x16ee   :  { %3153 = vsyncadd [#allocation4], 4294967264 }
0x16ef   :  { %2581 = vsyncpa [#allocation3], 1 }
0x16f0   :  { %2582 = vsyncpa [#allocation4], 1 }

</bundles_post_ra>
